<compile_context>
chip_gen: v6e
topology: v6e:2x2x1
jax: 0.10.0
libtpu: 0.0.40
codegen_flags: <defaults>
</compile_context>

<pallas_src>
import functools
import math

import jax
import jax.numpy as jnp
from jax.experimental import pallas as pl
from jax.experimental.pallas import tpu as pltpu


def _encoder_stack_kernel(num_heads,
                          x_ref, mbias_ref,
                          wqkv_ref, bqkv_ref, wo_ref, bo_ref,
                          g1_ref, be1_ref,
                          w1_ref, bf1_ref, w2_ref, bf2_ref,
                          g2_ref, be2_ref,
                          nw1_ref, nb1_ref, nw2_ref, nb2_ref,
                          o_ref,
                          acc_ref):
    layer = pl.program_id(1)
    num_layers = pl.num_programs(1)

    Bb, L, D = x_ref.shape
    H = num_heads
    hd = D // H
    M = Bb * L
    F = w1_ref.shape[2]
    scale = 1.0 / math.sqrt(hd)

    # Load the (bf16) input block into the VMEM-resident f32 activation at layer 0.
    @pl.when(layer == 0)
    def _():
        acc_ref[...] = x_ref[...].reshape(M, D).astype(jnp.float32)

    x = acc_ref[...]                                   # [M, D] f32, resident across layers
    xb = x.astype(jnp.bfloat16)

    # ---- fused QKV projection: one wide [M, D] x [D, 3D] MXU pass ----
    qkv = jnp.dot(xb, wqkv_ref[0], preferred_element_type=jnp.float32) + bqkv_ref[0]
    # Materialize to bf16 ONCE; fold 1/sqrt(hd) into q (M*D mults, not H*M*L).
    qb = (qkv[:, :D] * scale).astype(jnp.bfloat16).reshape(Bb, L, D)
    kb = qkv[:, D:2 * D].astype(jnp.bfloat16).reshape(Bb, L, D)
    vb = qkv[:, 2 * D:].astype(jnp.bfloat16).reshape(Bb, L, D)
    mb = mbias_ref[...]                                # [Bb, 1, L] additive key mask (0 / -1e9)

    # ---- attention: per-head lane slices + batched (over Bb) 3-D einsums, with the
    # output projection fused into the loop (no ctx scratch / masked stores). ----
    # TODO(synk): a single (batch, head) two-batch-dim dot_general would remove the
    # head unroll entirely but is not a reliably supported Mosaic lowering path.
    attn = jnp.zeros((M, D), jnp.float32)
    for h in range(H):
        q_h = qb[:, :, h * hd:(h + 1) * hd]                                       # [Bb, L, hd] bf16
        k_h = kb[:, :, h * hd:(h + 1) * hd]
        v_h = vb[:, :, h * hd:(h + 1) * hd]

        s = jnp.einsum('bqd,bkd->bqk', q_h, k_h,
                       preferred_element_type=jnp.float32) + mb                   # [Bb, L, L] f32
        s = s - jnp.max(s, axis=-1, keepdims=True)
        p = jnp.exp(s)
        denom = jnp.maximum(jnp.sum(p, axis=-1, keepdims=True), 1e-30)            # fully-masked guard
        p = p * pl.reciprocal(denom, approx=True)                                 # EUP, not a VPU divide
        ctx_h = jnp.einsum('bqk,bkd->bqd', p.astype(jnp.bfloat16), v_h,
                           preferred_element_type=jnp.float32)                    # [Bb, L, hd] f32
        attn = attn + jnp.dot(ctx_h.reshape(M, hd).astype(jnp.bfloat16),
                              wo_ref[0][h * hd:(h + 1) * hd, :],
                              preferred_element_type=jnp.float32)                 # fused out-proj
    attn = attn + bo_ref[0]

    # ---- residual + LayerNorm 1 (f32) ----
    h1 = x + attn
    mu1 = jnp.mean(h1, axis=-1, keepdims=True)
    var1 = jnp.mean((h1 - mu1) ** 2, axis=-1, keepdims=True)
    h1 = (h1 - mu1) * jax.lax.rsqrt(var1 + 1e-5) * g1_ref[0] + be1_ref[0]
    h1b = h1.astype(jnp.bfloat16)

    # ---- FFN: bf16 matmuls, f32 accumulation, ReLU, chunked over F to bound the
    # f32 [M, Fc] intermediate (largest single VMEM temp at real sizes). ----
    Fc = 2048 if (F > 2048 and F % 2048 == 0) else F
    ffn = jnp.zeros((M, D), jnp.float32)
    for c in range(F // Fc):
        f_c = jnp.dot(h1b, w1_ref[0][:, c * Fc:(c + 1) * Fc],
                      preferred_element_type=jnp.float32) + bf1_ref[0][:, c * Fc:(c + 1) * Fc]
        f_c = jnp.maximum(f_c, 0.0).astype(jnp.bfloat16)
        ffn = ffn + jnp.dot(f_c, w2_ref[0][c * Fc:(c + 1) * Fc, :],
                            preferred_element_type=jnp.float32)
    ffn = ffn + bf2_ref[0]

    # ---- residual + LayerNorm 2 (f32) ----
    h2 = h1 + ffn
    mu2 = jnp.mean(h2, axis=-1, keepdims=True)
    var2 = jnp.mean((h2 - mu2) ** 2, axis=-1, keepdims=True)
    out = (h2 - mu2) * jax.lax.rsqrt(var2 + 1e-5) * g2_ref[0] + be2_ref[0]

    acc_ref[...] = out                                  # stays in VMEM for the next layer

    # ---- last layer: take last sequence position + fused txt_necks (2 Linears) ----
    @pl.when(layer == num_layers - 1)
    def _():
        # Literal last position, exactly like torch `txt_enc_out[:, -1]`
        # (NOT the last *valid* token of masked samples).
        # Strided sublane read of rows L-1, 2L-1, ... from the resident activations.
        pred = acc_ref[pl.ds(L - 1, Bb, stride=L), :]                              # [Bb, D] f32
        nh = jnp.dot(pred.astype(jnp.bfloat16), nw1_ref[...],
                     preferred_element_type=jnp.float32) + nb1_ref[...]
        conc = jnp.dot(nh.astype(jnp.bfloat16), nw2_ref[...],
                       preferred_element_type=jnp.float32) + nb2_ref[...]          # [Bb, C*D]
        o_ref[:, 0, :] = conc.astype(o_ref.dtype)


def _tpu_defaults():
    """Generation-aware (vmem_limit_bytes, tensorcores_per_chip)."""
    vmem_phys = 128 * 1024 * 1024
    num_tc = 1
    try:
        kind = jax.devices()[0].device_kind.lower()
    except Exception:
        kind = ""
    if "v7" in kind:
        vmem_phys = 64 * 1024 * 1024
        num_tc = 2
    elif ("v4" in kind) or ("v5p" in kind):
        num_tc = 2
    try:  # refine physical VMEM if the query is available
        cap = int(getattr(pltpu.get_tpu_info(), "vmem_capacity_bytes", 0))
        if 32 * 1024 * 1024 <= cap <= 256 * 1024 * 1024:
            vmem_phys = cap
    except Exception:
        pass
    vmem_limit = min(int(vmem_phys * 0.8), 112 * 1024 * 1024)
    vmem_limit = max(vmem_limit, 32 * 1024 * 1024)
    return vmem_limit, num_tc


def text_encoder_forward(txt, txt_mask, params, *, num_heads, concept_nums,
                         batch_block=None):
    B, L, D = txt.shape
    NL = params['wqkv'].shape[0]
    F = params['w1'].shape[2]
    CD = params['nw2'].shape[1]

    vmem_limit, num_tc = _tpu_defaults()

    if batch_block is None:
        # Megacore chips (v4/v5p/v7x): split the batch across TensorCores so the
        # "parallel" axis has >1 step.  Single-TC chips (v5e/v6e): keep the whole
        # batch in one block so per-layer weights are streamed from HBM only once.
        Bb = B // num_tc if (num_tc > 1 and B % num_tc == 0) else B
    else:
        Bb = batch_block
    assert B % Bb == 0
    assert L % 8 == 0 and D % num_heads == 0
    # NOTE: for real model sizes keep D / 4*D multiples of 128, L a multiple of 128
    # (256 preferred on v6e/v7x), and pick Bb so M = Bb*L >= ~512 rows to amortize
    # per-layer weight streaming.

    # additive attention bias over key positions: 0 where valid, -1e9 where padded
    mbias = ((1.0 - txt_mask.astype(jnp.float32)) * -1e9).reshape(B, 1, L)
    txt_bf16 = txt.astype(jnp.bfloat16)                 # halve input HBM traffic / VMEM

    def layer_spec(shape):                              # per-layer stacked weight, indexed by l
        nd = len(shape)
        return pl.BlockSpec((1,) + shape, lambda b, l, _nd=nd: (l,) + (0,) * _nd)

    def const_spec(shape):                              # grid-invariant (resident) weight
        nd = len(shape)
        return pl.BlockSpec(shape, lambda b, l, _nd=nd: (0,) * _nd)

    kernel = functools.partial(_encoder_stack_kernel, num_heads)

    out3 = pl.pallas_call(
        kernel,
        out_shape=jax.ShapeDtypeStruct((B, 1, CD), txt.dtype),
        grid_spec=pltpu.PrefetchScalarGridSpec(
            num_scalar_prefetch=0,
            grid=(B // Bb, NL),
            in_specs=[
                pl.BlockSpec((Bb, L, D), lambda b, l: (b, 0, 0)),   # txt (bf16, read at layer 0)
                pl.BlockSpec((Bb, 1, L), lambda b, l: (b, 0, 0)),   # mask bias
                layer_spec((D, 3 * D)),                             # wqkv (bf16)
                layer_spec((1, 3 * D)),                             # bqkv
                layer_spec((D, D)),                                 # wo (bf16)
                layer_spec((1, D)),                                 # bo
                layer_spec((1, D)), layer_spec((1, D)),             # ln1 gamma / beta
                layer_spec((D, F)), layer_spec((1, F)),             # ffn w1 (bf16) / b1
                layer_spec((F, D)), layer_spec((1, D)),             # ffn w2 (bf16) / b2
                layer_spec((1, D)), layer_spec((1, D)),             # ln2 gamma / beta
                const_spec((D, D)), const_spec((1, D)),             # neck linear 1 (bf16) / bias
                const_spec((D, CD)), const_spec((1, CD)),           # neck linear 2 (bf16) / bias
            ],
            out_specs=pl.BlockSpec((Bb, 1, CD), lambda b, l: (b, 0, 0)),  # written at last layer
            scratch_shapes=[
                pltpu.VMEM((Bb * L, D), jnp.float32),               # resident activations
            ],
        ),
        compiler_params=pltpu.CompilerParams(
            dimension_semantics=("parallel", "arbitrary"),
            vmem_limit_bytes=vmem_limit,                            # generation-aware
        ),
    )(txt_bf16, mbias,
      params['wqkv'], params['bqkv'], params['wo'], params['bo'],
      params['g1'], params['be1'],
      params['w1'], params['bf1'], params['w2'], params['bf2'],
      params['g2'], params['be2'],
      params['nw1'], params['nb1'], params['nw2'], params['nb2'])

    txt_concept = out3.reshape(B, CD)
    # torch.stack(torch.split(t, concept_nums, -1), 1).permute(0, 2, 1) -> [B, C, D]
    return txt_concept.reshape(B, D, concept_nums).transpose(0, 2, 1)


def init_params(key, num_layers, D, H, F, concept_nums):
    s = 0.02
    keys = jax.random.split(key, num_layers + 1)
    names = ['wqkv', 'bqkv', 'wo', 'bo', 'g1', 'be1',
             'w1', 'bf1', 'w2', 'bf2', 'g2', 'be2']
    layers = {n: [] for n in names}
    for lk in keys[:num_layers]:
        k = jax.random.split(lk, 6)
        wq = s * jax.random.normal(k[0], (D, D), jnp.float32)
        wk = s * jax.random.normal(k[1], (D, D), jnp.float32)
        wv = s * jax.random.normal(k[2], (D, D), jnp.float32)
        layers['wqkv'].append(jnp.concatenate([wq, wk, wv], axis=1))
        layers['bqkv'].append(jnp.zeros((1, 3 * D), jnp.float32))
        layers['wo'].append(s * jax.random.normal(k[3], (D, D), jnp.float32))
        layers['bo'].append(jnp.zeros((1, D), jnp.float32))
        layers['g1'].append(jnp.ones((1, D), jnp.float32))
        layers['be1'].append(jnp.zeros((1, D), jnp.float32))
        layers['w1'].append(s * jax.random.normal(k[4], (D, F), jnp.float32))
        layers['bf1'].append(jnp.zeros((1, F), jnp.float32))
        layers['w2'].append(s * jax.random.normal(k[5], (F, D), jnp.float32))
        layers['bf2'].append(jnp.zeros((1, D), jnp.float32))
        layers['g2'].append(jnp.ones((1, D), jnp.float32))
        layers['be2'].append(jnp.zeros((1, D), jnp.float32))
    params = {}
    for name, vals in layers.items():
        stacked = jnp.stack(vals, axis=0)
        if name in ('wqkv', 'wo', 'w1', 'w2'):          # MXU operands in bf16
            stacked = stacked.astype(jnp.bfloat16)
        params[name] = stacked
    nk = jax.random.split(keys[-1], 2)
    params['nw1'] = (s * jax.random.normal(nk[0], (D, D), jnp.float32)).astype(jnp.bfloat16)
    params['nb1'] = jnp.zeros((1, D), jnp.float32)
    params['nw2'] = (s * jax.random.normal(nk[1], (D, concept_nums * D),
                                           jnp.float32)).astype(jnp.bfloat16)
    params['nb2'] = jnp.zeros((1, concept_nums * D), jnp.float32)
    return params


if __name__ == "__main__":
    B, L, D, H = 2, 8, 32, 4
    num_layers = 2
    concept_nums = 3
    F = 4 * D

    key = jax.random.PRNGKey(0)
    k_txt, k_params = jax.random.split(key)

    txt = jax.random.normal(k_txt, (B, L, D), jnp.float32)
    txt_mask = jnp.ones((B, L), jnp.float32).at[1, 6:].set(0.0)   # second sample padded

    params = init_params(k_params, num_layers, D, H, F, concept_nums)

    out = text_encoder_forward(txt, txt_mask, params,
                               num_heads=H, concept_nums=concept_nums)
    out = jax.block_until_ready(out)
    assert out.shape == (B, concept_nums, D), out.shape
    assert bool(jnp.all(jnp.isfinite(out)))
    print("KERNEL_OK")
</pallas_src>

<mosaic_0001>
module attributes {stable_mosaic.version = 11 : i64} {
  func.func @_encoder_stack_kernel(%arg0: i32, %arg1: i32, %arg2: memref<2x8x32xbf16, #tpu.memory_space<vmem>>, %arg3: memref<2x1x8xf32, #tpu.memory_space<vmem>>, %arg4: memref<1x32x96xbf16, #tpu.memory_space<vmem>>, %arg5: memref<1x1x96xf32, #tpu.memory_space<vmem>>, %arg6: memref<1x32x32xbf16, #tpu.memory_space<vmem>>, %arg7: memref<1x1x32xf32, #tpu.memory_space<vmem>>, %arg8: memref<1x1x32xf32, #tpu.memory_space<vmem>>, %arg9: memref<1x1x32xf32, #tpu.memory_space<vmem>>, %arg10: memref<1x32x128xbf16, #tpu.memory_space<vmem>>, %arg11: memref<1x1x128xf32, #tpu.memory_space<vmem>>, %arg12: memref<1x128x32xbf16, #tpu.memory_space<vmem>>, %arg13: memref<1x1x32xf32, #tpu.memory_space<vmem>>, %arg14: memref<1x1x32xf32, #tpu.memory_space<vmem>>, %arg15: memref<1x1x32xf32, #tpu.memory_space<vmem>>, %arg16: memref<32x32xbf16, #tpu.memory_space<vmem>>, %arg17: memref<1x32xf32, #tpu.memory_space<vmem>>, %arg18: memref<32x96xbf16, #tpu.memory_space<vmem>>, %arg19: memref<1x96xf32, #tpu.memory_space<vmem>>, %arg20: memref<2x1x96xf32, #tpu.memory_space<vmem>>, %arg21: memref<16x32xf32, #tpu.memory_space<vmem>>) attributes {dimension_semantics = [#tpu.dimension_semantics<parallel>, #tpu.dimension_semantics<arbitrary>], iteration_bounds = array<i64: 1, 2>, scalar_prefetch = 0 : i64, scratch_operands = 1 : i64, tpu.core_type = #tpu.core_type<tc>, window_params = [{transform_indices = @transform_0, window_bounds = array<i64: 2, 8, 32>}, {transform_indices = @transform_1, window_bounds = array<i64: 2, 1, 8>}, {transform_indices = @transform_2, window_bounds = array<i64: 1, 32, 96>}, {transform_indices = @transform_3, window_bounds = array<i64: 1, 1, 96>}, {transform_indices = @transform_4, window_bounds = array<i64: 1, 32, 32>}, {transform_indices = @transform_5, window_bounds = array<i64: 1, 1, 32>}, {transform_indices = @transform_6, window_bounds = array<i64: 1, 1, 32>}, {transform_indices = @transform_7, window_bounds = array<i64: 1, 1, 32>}, {transform_indices = @transform_8, window_bounds = array<i64: 1, 32, 128>}, {transform_indices = @transform_9, window_bounds = array<i64: 1, 1, 128>}, {transform_indices = @transform_10, window_bounds = array<i64: 1, 128, 32>}, {transform_indices = @transform_11, window_bounds = array<i64: 1, 1, 32>}, {transform_indices = @transform_12, window_bounds = array<i64: 1, 1, 32>}, {transform_indices = @transform_13, window_bounds = array<i64: 1, 1, 32>}, {pipeline_mode = #tpu.pipeline_mode<synchronous>, transform_indices = @transform_14, window_bounds = array<i64: 32, 32>}, {pipeline_mode = #tpu.pipeline_mode<synchronous>, transform_indices = @transform_15, window_bounds = array<i64: 1, 32>}, {pipeline_mode = #tpu.pipeline_mode<synchronous>, transform_indices = @transform_16, window_bounds = array<i64: 32, 96>}, {pipeline_mode = #tpu.pipeline_mode<synchronous>, transform_indices = @transform_17, window_bounds = array<i64: 1, 96>}, {transform_indices = @transform_18, window_bounds = array<i64: 2, 1, 96>}]} {
    %c0_i32 = arith.constant 0 : i32
    %0 = arith.cmpi eq, %arg1, %c0_i32 : i32
    %1 = arith.extui %0 : i1 to i32
    %c0_i32_0 = arith.constant 0 : i32
    %2 = arith.cmpi ne, %1, %c0_i32_0 : i32
    scf.if %2 {
      %c0_93 = arith.constant 0 : index
      %c0_94 = arith.constant 0 : index
      %c0_95 = arith.constant 0 : index
      %215 = vector.load %arg2[%c0_93, %c0_94, %c0_95] : memref<2x8x32xbf16, #tpu.memory_space<vmem>>, vector<2x8x32xbf16>
      %216 = vector.shape_cast %215 : vector<2x8x32xbf16> to vector<16x32xbf16>
      %217 = arith.extf %216 : vector<16x32xbf16> to vector<16x32xf32>
      %c0_96 = arith.constant 0 : index
      %c0_97 = arith.constant 0 : index
      %218 = vector.load %arg21[%c0_96, %c0_97] : memref<16x32xf32, #tpu.memory_space<vmem>>, vector<16x32xf32>
      tpu.vector_store %arg21[%c0_96, %c0_97], %217 {strides = array<i32>} : memref<16x32xf32, #tpu.memory_space<vmem>>, vector<16x32xf32>,
    } else {
    }
    %c0 = arith.constant 0 : index
    %c0_1 = arith.constant 0 : index
    %3 = vector.load %arg21[%c0, %c0_1] : memref<16x32xf32, #tpu.memory_space<vmem>>, vector<16x32xf32>
    %4 = arith.truncf %3 : vector<16x32xf32> to vector<16x32xbf16>
    %c0_2 = arith.constant 0 : index
    %c0_3 = arith.constant 0 : index
    %c0_4 = arith.constant 0 : index
    %5 = vector.load %arg4[%c0_2, %c0_3, %c0_4] : memref<1x32x96xbf16, #tpu.memory_space<vmem>>, vector<1x32x96xbf16>
    %6 = vector.shape_cast %5 : vector<1x32x96xbf16> to vector<32x96xbf16>
    %cst = arith.constant dense<0.000000e+00> : vector<16x96xf32>
    %7 = tpu.matmul %4, %6, %cst {dimension_numbers = #tpu.dot_dimension_numbers<[1], [0], [0], [1], [0, 0, 1, 1], [], []>} : vector<16x32xbf16>, vector<32x96xbf16>, vector<16x96xf32> -> vector<16x96xf32>
    %c0_5 = arith.constant 0 : index
    %c0_6 = arith.constant 0 : index
    %c0_7 = arith.constant 0 : index
    %8 = vector.load %arg5[%c0_5, %c0_6, %c0_7] : memref<1x1x96xf32, #tpu.memory_space<vmem>>, vector<1x1x96xf32>
    %9 = vector.shape_cast %8 : vector<1x1x96xf32> to vector<1x96xf32>
    %10 = vector.broadcast %9 : vector<1x96xf32> to vector<16x96xf32>
    %11 = arith.addf %7, %10 : vector<16x96xf32>
    %12 = vector.extract_strided_slice %11 {offsets = [0, 0], sizes = [16, 32], strides = [1, 1]} : vector<16x96xf32> to vector<16x32xf32>
    %cst_8 = arith.constant 0.353553385 : f32
    %13 = vector.broadcast %cst_8 : f32 to vector<16x32xf32>
    %14 = arith.mulf %12, %13 : vector<16x32xf32>
    %15 = arith.truncf %14 : vector<16x32xf32> to vector<16x32xbf16>
    %16 = vector.shape_cast %15 : vector<16x32xbf16> to vector<2x8x32xbf16>
    %17 = vector.extract_strided_slice %11 {offsets = [0, 32], sizes = [16, 32], strides = [1, 1]} : vector<16x96xf32> to vector<16x32xf32>
    %18 = arith.truncf %17 : vector<16x32xf32> to vector<16x32xbf16>
    %19 = vector.shape_cast %18 : vector<16x32xbf16> to vector<2x8x32xbf16>
    %20 = vector.extract_strided_slice %11 {offsets = [0, 64], sizes = [16, 32], strides = [1, 1]} : vector<16x96xf32> to vector<16x32xf32>
    %21 = arith.truncf %20 : vector<16x32xf32> to vector<16x32xbf16>
    %22 = vector.shape_cast %21 : vector<16x32xbf16> to vector<2x8x32xbf16>
    %c0_9 = arith.constant 0 : index
    %c0_10 = arith.constant 0 : index
    %c0_11 = arith.constant 0 : index
    %23 = vector.load %arg3[%c0_9, %c0_10, %c0_11] : memref<2x1x8xf32, #tpu.memory_space<vmem>>, vector<2x1x8xf32>
    %cst_12 = arith.constant 0.000000e+00 : f32
    %24 = vector.broadcast %cst_12 : f32 to vector<16x32xf32>
    %25 = vector.extract_strided_slice %16 {offsets = [0, 0, 0], sizes = [2, 8, 8], strides = [1, 1, 1]} : vector<2x8x32xbf16> to vector<2x8x8xbf16>
    %26 = vector.extract_strided_slice %19 {offsets = [0, 0, 0], sizes = [2, 8, 8], strides = [1, 1, 1]} : vector<2x8x32xbf16> to vector<2x8x8xbf16>
    %27 = vector.extract_strided_slice %22 {offsets = [0, 0, 0], sizes = [2, 8, 8], strides = [1, 1, 1]} : vector<2x8x32xbf16> to vector<2x8x8xbf16>
    "tpu.trace_start"() <{level = 10 : i32, message = "bqd,bkd->bqk"}> : () -> ()
    %cst_13 = arith.constant dense<0.000000e+00> : vector<2x8x8xf32>
    %28 = tpu.matmul %25, %26, %cst_13 {dimension_numbers = #tpu.dot_dimension_numbers<[2], [2], [1], [1], [0, 0, 0, 1, 1, 1], [0], [0]>} : vector<2x8x8xbf16>, vector<2x8x8xbf16>, vector<2x8x8xf32> -> vector<2x8x8xf32>
    "tpu.trace_stop"() : () -> ()
    %29 = vector.broadcast %23 : vector<2x1x8xf32> to vector<2x8x8xf32>
    %30 = arith.addf %28, %29 : vector<2x8x8xf32>
    %cst_14 = arith.constant dense<0xFF800000> : vector<2x8xf32>
    %31 = vector.multi_reduction <maximumf>, %30, %cst_14 [2] : vector<2x8x8xf32> to vector<2x8xf32>
    %32 = vector.shape_cast %31 : vector<2x8xf32> to vector<2x8x1xf32>
    %33 = vector.broadcast %32 : vector<2x8x1xf32> to vector<2x8x8xf32>
    %34 = arith.subf %30, %33 : vector<2x8x8xf32>
    %35 = math.exp %34 : vector<2x8x8xf32>
    %cst_15 = arith.constant dense<0.000000e+00> : vector<2x8xf32>
    %36 = vector.multi_reduction <add>, %35, %cst_15 [2] : vector<2x8x8xf32> to vector<2x8xf32>
    %37 = vector.shape_cast %36 : vector<2x8xf32> to vector<2x8x1xf32>
    %cst_16 = arith.constant 1.000000e-30 : f32
    %38 = vector.broadcast %cst_16 : f32 to vector<2x8x1xf32>
    %39 = arith.maximumf %37, %38 : vector<2x8x1xf32>
    %40 = tpu.reciprocal %39 {approx = true} : vector<2x8x1xf32> -> vector<2x8x1xf32>
    %41 = vector.broadcast %40 : vector<2x8x1xf32> to vector<2x8x8xf32>
    %42 = arith.mulf %35, %41 : vector<2x8x8xf32>
    %43 = arith.truncf %42 : vector<2x8x8xf32> to vector<2x8x8xbf16>
    "tpu.trace_start"() <{level = 10 : i32, message = "bqk,bkd->bqd"}> : () -> ()
    %cst_17 = arith.constant dense<0.000000e+00> : vector<2x8x8xf32>
    %44 = tpu.matmul %43, %27, %cst_17 {dimension_numbers = #tpu.dot_dimension_numbers<[2], [1], [1], [2], [0, 0, 0, 1, 1, 2], [0], [0]>} : vector<2x8x8xbf16>, vector<2x8x8xbf16>, vector<2x8x8xf32> -> vector<2x8x8xf32>
    "tpu.trace_stop"() : () -> ()
    %45 = vector.shape_cast %44 : vector<2x8x8xf32> to vector<16x8xf32>
    %46 = arith.truncf %45 : vector<16x8xf32> to vector<16x8xbf16>
    %c0_18 = arith.constant 0 : index
    %c0_19 = arith.constant 0 : index
    %c0_20 = arith.constant 0 : index
    %47 = vector.load %arg6[%c0_18, %c0_19, %c0_20] : memref<1x32x32xbf16, #tpu.memory_space<vmem>>, vector<1x32x32xbf16>
    %48 = vector.shape_cast %47 : vector<1x32x32xbf16> to vector<32x32xbf16>
    %49 = vector.extract_strided_slice %48 {offsets = [0, 0], sizes = [8, 32], strides = [1, 1]} : vector<32x32xbf16> to vector<8x32xbf16>
    %cst_21 = arith.constant dense<0.000000e+00> : vector<16x32xf32>
    %50 = tpu.matmul %46, %49, %cst_21 {dimension_numbers = #tpu.dot_dimension_numbers<[1], [0], [0], [1], [0, 0, 1, 1], [], []>} : vector<16x8xbf16>, vector<8x32xbf16>, vector<16x32xf32> -> vector<16x32xf32>
    %51 = arith.addf %24, %50 : vector<16x32xf32>
    %52 = vector.extract_strided_slice %16 {offsets = [0, 0, 8], sizes = [2, 8, 8], strides = [1, 1, 1]} : vector<2x8x32xbf16> to vector<2x8x8xbf16>
    %53 = vector.extract_strided_slice %19 {offsets = [0, 0, 8], sizes = [2, 8, 8], strides = [1, 1, 1]} : vector<2x8x32xbf16> to vector<2x8x8xbf16>
    %54 = vector.extract_strided_slice %22 {offsets = [0, 0, 8], sizes = [2, 8, 8], strides = [1, 1, 1]} : vector<2x8x32xbf16> to vector<2x8x8xbf16>
    "tpu.trace_start"() <{level = 10 : i32, message = "bqd,bkd->bqk"}> : () -> ()
    %cst_22 = arith.constant dense<0.000000e+00> : vector<2x8x8xf32>
    %55 = tpu.matmul %52, %53, %cst_22 {dimension_numbers = #tpu.dot_dimension_numbers<[2], [2], [1], [1], [0, 0, 0, 1, 1, 1], [0], [0]>} : vector<2x8x8xbf16>, vector<2x8x8xbf16>, vector<2x8x8xf32> -> vector<2x8x8xf32>
    "tpu.trace_stop"() : () -> ()
    %56 = vector.broadcast %23 : vector<2x1x8xf32> to vector<2x8x8xf32>
    %57 = arith.addf %55, %56 : vector<2x8x8xf32>
    %cst_23 = arith.constant dense<0xFF800000> : vector<2x8xf32>
    %58 = vector.multi_reduction <maximumf>, %57, %cst_23 [2] : vector<2x8x8xf32> to vector<2x8xf32>
    %59 = vector.shape_cast %58 : vector<2x8xf32> to vector<2x8x1xf32>
    %60 = vector.broadcast %59 : vector<2x8x1xf32> to vector<2x8x8xf32>
    %61 = arith.subf %57, %60 : vector<2x8x8xf32>
    %62 = math.exp %61 : vector<2x8x8xf32>
    %cst_24 = arith.constant dense<0.000000e+00> : vector<2x8xf32>
    %63 = vector.multi_reduction <add>, %62, %cst_24 [2] : vector<2x8x8xf32> to vector<2x8xf32>
    %64 = vector.shape_cast %63 : vector<2x8xf32> to vector<2x8x1xf32>
    %cst_25 = arith.constant 1.000000e-30 : f32
    %65 = vector.broadcast %cst_25 : f32 to vector<2x8x1xf32>
    %66 = arith.maximumf %64, %65 : vector<2x8x1xf32>
    %67 = tpu.reciprocal %66 {approx = true} : vector<2x8x1xf32> -> vector<2x8x1xf32>
    %68 = vector.broadcast %67 : vector<2x8x1xf32> to vector<2x8x8xf32>
    %69 = arith.mulf %62, %68 : vector<2x8x8xf32>
    %70 = arith.truncf %69 : vector<2x8x8xf32> to vector<2x8x8xbf16>
    "tpu.trace_start"() <{level = 10 : i32, message = "bqk,bkd->bqd"}> : () -> ()
    %cst_26 = arith.constant dense<0.000000e+00> : vector<2x8x8xf32>
    %71 = tpu.matmul %70, %54, %cst_26 {dimension_numbers = #tpu.dot_dimension_numbers<[2], [1], [1], [2], [0, 0, 0, 1, 1, 2], [0], [0]>} : vector<2x8x8xbf16>, vector<2x8x8xbf16>, vector<2x8x8xf32> -> vector<2x8x8xf32>
    "tpu.trace_stop"() : () -> ()
    %72 = vector.shape_cast %71 : vector<2x8x8xf32> to vector<16x8xf32>
    %73 = arith.truncf %72 : vector<16x8xf32> to vector<16x8xbf16>
    %c0_27 = arith.constant 0 : index
    %c0_28 = arith.constant 0 : index
    %c0_29 = arith.constant 0 : index
    %74 = vector.load %arg6[%c0_27, %c0_28, %c0_29] : memref<1x32x32xbf16, #tpu.memory_space<vmem>>, vector<1x32x32xbf16>
    %75 = vector.shape_cast %74 : vector<1x32x32xbf16> to vector<32x32xbf16>
    %76 = vector.extract_strided_slice %75 {offsets = [8, 0], sizes = [8, 32], strides = [1, 1]} : vector<32x32xbf16> to vector<8x32xbf16>
    %cst_30 = arith.constant dense<0.000000e+00> : vector<16x32xf32>
    %77 = tpu.matmul %73, %76, %cst_30 {dimension_numbers = #tpu.dot_dimension_numbers<[1], [0], [0], [1], [0, 0, 1, 1], [], []>} : vector<16x8xbf16>, vector<8x32xbf16>, vector<16x32xf32> -> vector<16x32xf32>
    %78 = arith.addf %51, %77 : vector<16x32xf32>
    %79 = vector.extract_strided_slice %16 {offsets = [0, 0, 16], sizes = [2, 8, 8], strides = [1, 1, 1]} : vector<2x8x32xbf16> to vector<2x8x8xbf16>
    %80 = vector.extract_strided_slice %19 {offsets = [0, 0, 16], sizes = [2, 8, 8], strides = [1, 1, 1]} : vector<2x8x32xbf16> to vector<2x8x8xbf16>
    %81 = vector.extract_strided_slice %22 {offsets = [0, 0, 16], sizes = [2, 8, 8], strides = [1, 1, 1]} : vector<2x8x32xbf16> to vector<2x8x8xbf16>
    "tpu.trace_start"() <{level = 10 : i32, message = "bqd,bkd->bqk"}> : () -> ()
    %cst_31 = arith.constant dense<0.000000e+00> : vector<2x8x8xf32>
    %82 = tpu.matmul %79, %80, %cst_31 {dimension_numbers = #tpu.dot_dimension_numbers<[2], [2], [1], [1], [0, 0, 0, 1, 1, 1], [0], [0]>} : vector<2x8x8xbf16>, vector<2x8x8xbf16>, vector<2x8x8xf32> -> vector<2x8x8xf32>
    "tpu.trace_stop"() : () -> ()
    %83 = vector.broadcast %23 : vector<2x1x8xf32> to vector<2x8x8xf32>
    %84 = arith.addf %82, %83 : vector<2x8x8xf32>
    %cst_32 = arith.constant dense<0xFF800000> : vector<2x8xf32>
    %85 = vector.multi_reduction <maximumf>, %84, %cst_32 [2] : vector<2x8x8xf32> to vector<2x8xf32>
    %86 = vector.shape_cast %85 : vector<2x8xf32> to vector<2x8x1xf32>
    %87 = vector.broadcast %86 : vector<2x8x1xf32> to vector<2x8x8xf32>
    %88 = arith.subf %84, %87 : vector<2x8x8xf32>
    %89 = math.exp %88 : vector<2x8x8xf32>
    %cst_33 = arith.constant dense<0.000000e+00> : vector<2x8xf32>
    %90 = vector.multi_reduction <add>, %89, %cst_33 [2] : vector<2x8x8xf32> to vector<2x8xf32>
    %91 = vector.shape_cast %90 : vector<2x8xf32> to vector<2x8x1xf32>
    %cst_34 = arith.constant 1.000000e-30 : f32
    %92 = vector.broadcast %cst_34 : f32 to vector<2x8x1xf32>
    %93 = arith.maximumf %91, %92 : vector<2x8x1xf32>
    %94 = tpu.reciprocal %93 {approx = true} : vector<2x8x1xf32> -> vector<2x8x1xf32>
    %95 = vector.broadcast %94 : vector<2x8x1xf32> to vector<2x8x8xf32>
    %96 = arith.mulf %89, %95 : vector<2x8x8xf32>
    %97 = arith.truncf %96 : vector<2x8x8xf32> to vector<2x8x8xbf16>
    "tpu.trace_start"() <{level = 10 : i32, message = "bqk,bkd->bqd"}> : () -> ()
    %cst_35 = arith.constant dense<0.000000e+00> : vector<2x8x8xf32>
    %98 = tpu.matmul %97, %81, %cst_35 {dimension_numbers = #tpu.dot_dimension_numbers<[2], [1], [1], [2], [0, 0, 0, 1, 1, 2], [0], [0]>} : vector<2x8x8xbf16>, vector<2x8x8xbf16>, vector<2x8x8xf32> -> vector<2x8x8xf32>
    "tpu.trace_stop"() : () -> ()
    %99 = vector.shape_cast %98 : vector<2x8x8xf32> to vector<16x8xf32>
    %100 = arith.truncf %99 : vector<16x8xf32> to vector<16x8xbf16>
    %c0_36 = arith.constant 0 : index
    %c0_37 = arith.constant 0 : index
    %c0_38 = arith.constant 0 : index
    %101 = vector.load %arg6[%c0_36, %c0_37, %c0_38] : memref<1x32x32xbf16, #tpu.memory_space<vmem>>, vector<1x32x32xbf16>
    %102 = vector.shape_cast %101 : vector<1x32x32xbf16> to vector<32x32xbf16>
    %103 = vector.extract_strided_slice %102 {offsets = [16, 0], sizes = [8, 32], strides = [1, 1]} : vector<32x32xbf16> to vector<8x32xbf16>
    %cst_39 = arith.constant dense<0.000000e+00> : vector<16x32xf32>
    %104 = tpu.matmul %100, %103, %cst_39 {dimension_numbers = #tpu.dot_dimension_numbers<[1], [0], [0], [1], [0, 0, 1, 1], [], []>} : vector<16x8xbf16>, vector<8x32xbf16>, vector<16x32xf32> -> vector<16x32xf32>
    %105 = arith.addf %78, %104 : vector<16x32xf32>
    %106 = vector.extract_strided_slice %16 {offsets = [0, 0, 24], sizes = [2, 8, 8], strides = [1, 1, 1]} : vector<2x8x32xbf16> to vector<2x8x8xbf16>
    %107 = vector.extract_strided_slice %19 {offsets = [0, 0, 24], sizes = [2, 8, 8], strides = [1, 1, 1]} : vector<2x8x32xbf16> to vector<2x8x8xbf16>
    %108 = vector.extract_strided_slice %22 {offsets = [0, 0, 24], sizes = [2, 8, 8], strides = [1, 1, 1]} : vector<2x8x32xbf16> to vector<2x8x8xbf16>
    "tpu.trace_start"() <{level = 10 : i32, message = "bqd,bkd->bqk"}> : () -> ()
    %cst_40 = arith.constant dense<0.000000e+00> : vector<2x8x8xf32>
    %109 = tpu.matmul %106, %107, %cst_40 {dimension_numbers = #tpu.dot_dimension_numbers<[2], [2], [1], [1], [0, 0, 0, 1, 1, 1], [0], [0]>} : vector<2x8x8xbf16>, vector<2x8x8xbf16>, vector<2x8x8xf32> -> vector<2x8x8xf32>
    "tpu.trace_stop"() : () -> ()
    %110 = vector.broadcast %23 : vector<2x1x8xf32> to vector<2x8x8xf32>
    %111 = arith.addf %109, %110 : vector<2x8x8xf32>
    %cst_41 = arith.constant dense<0xFF800000> : vector<2x8xf32>
    %112 = vector.multi_reduction <maximumf>, %111, %cst_41 [2] : vector<2x8x8xf32> to vector<2x8xf32>
    %113 = vector.shape_cast %112 : vector<2x8xf32> to vector<2x8x1xf32>
    %114 = vector.broadcast %113 : vector<2x8x1xf32> to vector<2x8x8xf32>
    %115 = arith.subf %111, %114 : vector<2x8x8xf32>
    %116 = math.exp %115 : vector<2x8x8xf32>
    %cst_42 = arith.constant dense<0.000000e+00> : vector<2x8xf32>
    %117 = vector.multi_reduction <add>, %116, %cst_42 [2] : vector<2x8x8xf32> to vector<2x8xf32>
    %118 = vector.shape_cast %117 : vector<2x8xf32> to vector<2x8x1xf32>
    %cst_43 = arith.constant 1.000000e-30 : f32
    %119 = vector.broadcast %cst_43 : f32 to vector<2x8x1xf32>
    %120 = arith.maximumf %118, %119 : vector<2x8x1xf32>
    %121 = tpu.reciprocal %120 {approx = true} : vector<2x8x1xf32> -> vector<2x8x1xf32>
    %122 = vector.broadcast %121 : vector<2x8x1xf32> to vector<2x8x8xf32>
    %123 = arith.mulf %116, %122 : vector<2x8x8xf32>
    %124 = arith.truncf %123 : vector<2x8x8xf32> to vector<2x8x8xbf16>
    "tpu.trace_start"() <{level = 10 : i32, message = "bqk,bkd->bqd"}> : () -> ()
    %cst_44 = arith.constant dense<0.000000e+00> : vector<2x8x8xf32>
    %125 = tpu.matmul %124, %108, %cst_44 {dimension_numbers = #tpu.dot_dimension_numbers<[2], [1], [1], [2], [0, 0, 0, 1, 1, 2], [0], [0]>} : vector<2x8x8xbf16>, vector<2x8x8xbf16>, vector<2x8x8xf32> -> vector<2x8x8xf32>
    "tpu.trace_stop"() : () -> ()
    %126 = vector.shape_cast %125 : vector<2x8x8xf32> to vector<16x8xf32>
    %127 = arith.truncf %126 : vector<16x8xf32> to vector<16x8xbf16>
    %c0_45 = arith.constant 0 : index
    %c0_46 = arith.constant 0 : index
    %c0_47 = arith.constant 0 : index
    %128 = vector.load %arg6[%c0_45, %c0_46, %c0_47] : memref<1x32x32xbf16, #tpu.memory_space<vmem>>, vector<1x32x32xbf16>
    %129 = vector.shape_cast %128 : vector<1x32x32xbf16> to vector<32x32xbf16>
    %130 = vector.extract_strided_slice %129 {offsets = [24, 0], sizes = [8, 32], strides = [1, 1]} : vector<32x32xbf16> to vector<8x32xbf16>
    %cst_48 = arith.constant dense<0.000000e+00> : vector<16x32xf32>
    %131 = tpu.matmul %127, %130, %cst_48 {dimension_numbers = #tpu.dot_dimension_numbers<[1], [0], [0], [1], [0, 0, 1, 1], [], []>} : vector<16x8xbf16>, vector<8x32xbf16>, vector<16x32xf32> -> vector<16x32xf32>
    %132 = arith.addf %105, %131 : vector<16x32xf32>
    %c0_49 = arith.constant 0 : index
    %c0_50 = arith.constant 0 : index
    %c0_51 = arith.constant 0 : index
    %133 = vector.load %arg7[%c0_49, %c0_50, %c0_51] : memref<1x1x32xf32, #tpu.memory_space<vmem>>, vector<1x1x32xf32>
    %134 = vector.shape_cast %133 : vector<1x1x32xf32> to vector<1x32xf32>
    %135 = vector.broadcast %134 : vector<1x32xf32> to vector<16x32xf32>
    %136 = arith.addf %132, %135 : vector<16x32xf32>
    %137 = arith.addf %3, %136 : vector<16x32xf32>
    %cst_52 = arith.constant dense<0.000000e+00> : vector<16xf32>
    %138 = vector.multi_reduction <add>, %137, %cst_52 [1] : vector<16x32xf32> to vector<16xf32>
    %139 = vector.shape_cast %138 : vector<16xf32> to vector<16x1xf32>
    %cst_53 = arith.constant 3.200000e+01 : f32
    %140 = vector.broadcast %cst_53 : f32 to vector<16x1xf32>
    %141 = arith.divf %139, %140 : vector<16x1xf32>
    %142 = vector.broadcast %141 : vector<16x1xf32> to vector<16x32xf32>
    %143 = arith.subf %137, %142 : vector<16x32xf32>
    %144 = arith.mulf %143, %143 : vector<16x32xf32>
    %cst_54 = arith.constant dense<0.000000e+00> : vector<16xf32>
    %145 = vector.multi_reduction <add>, %144, %cst_54 [1] : vector<16x32xf32> to vector<16xf32>
    %146 = vector.shape_cast %145 : vector<16xf32> to vector<16x1xf32>
    %cst_55 = arith.constant 3.200000e+01 : f32
    %147 = vector.broadcast %cst_55 : f32 to vector<16x1xf32>
    %148 = arith.divf %146, %147 : vector<16x1xf32>
    %149 = vector.broadcast %141 : vector<16x1xf32> to vector<16x32xf32>
    %150 = arith.subf %137, %149 : vector<16x32xf32>
    %cst_56 = arith.constant 9.99999974E-6 : f32
    %151 = vector.broadcast %cst_56 : f32 to vector<16x1xf32>
    %152 = arith.addf %148, %151 : vector<16x1xf32>
    %153 = math.rsqrt %152 : vector<16x1xf32>
    %154 = vector.broadcast %153 : vector<16x1xf32> to vector<16x32xf32>
    %155 = arith.mulf %150, %154 : vector<16x32xf32>
    %c0_57 = arith.constant 0 : index
    %c0_58 = arith.constant 0 : index
    %c0_59 = arith.constant 0 : index
    %156 = vector.load %arg8[%c0_57, %c0_58, %c0_59] : memref<1x1x32xf32, #tpu.memory_space<vmem>>, vector<1x1x32xf32>
    %157 = vector.shape_cast %156 : vector<1x1x32xf32> to vector<1x32xf32>
    %158 = vector.broadcast %157 : vector<1x32xf32> to vector<16x32xf32>
    %159 = arith.mulf %155, %158 : vector<16x32xf32>
    %c0_60 = arith.constant 0 : index
    %c0_61 = arith.constant 0 : index
    %c0_62 = arith.constant 0 : index
    %160 = vector.load %arg9[%c0_60, %c0_61, %c0_62] : memref<1x1x32xf32, #tpu.memory_space<vmem>>, vector<1x1x32xf32>
    %161 = vector.shape_cast %160 : vector<1x1x32xf32> to vector<1x32xf32>
    %162 = vector.broadcast %161 : vector<1x32xf32> to vector<16x32xf32>
    %163 = arith.addf %159, %162 : vector<16x32xf32>
    %164 = arith.truncf %163 : vector<16x32xf32> to vector<16x32xbf16>
    %cst_63 = arith.constant 0.000000e+00 : f32
    %165 = vector.broadcast %cst_63 : f32 to vector<16x32xf32>
    %c0_64 = arith.constant 0 : index
    %c0_65 = arith.constant 0 : index
    %c0_66 = arith.constant 0 : index
    %166 = vector.load %arg10[%c0_64, %c0_65, %c0_66] : memref<1x32x128xbf16, #tpu.memory_space<vmem>>, vector<1x32x128xbf16>
    %167 = vector.shape_cast %166 : vector<1x32x128xbf16> to vector<32x128xbf16>
    %cst_67 = arith.constant dense<0.000000e+00> : vector<16x128xf32>
    %168 = tpu.matmul %164, %167, %cst_67 {dimension_numbers = #tpu.dot_dimension_numbers<[1], [0], [0], [1], [0, 0, 1, 1], [], []>} : vector<16x32xbf16>, vector<32x128xbf16>, vector<16x128xf32> -> vector<16x128xf32>
    %c0_68 = arith.constant 0 : index
    %c0_69 = arith.constant 0 : index
    %c0_70 = arith.constant 0 : index
    %169 = vector.load %arg11[%c0_68, %c0_69, %c0_70] : memref<1x1x128xf32, #tpu.memory_space<vmem>>, vector<1x1x128xf32>
    %170 = vector.shape_cast %169 : vector<1x1x128xf32> to vector<1x128xf32>
    %171 = vector.broadcast %170 : vector<1x128xf32> to vector<16x128xf32>
    %172 = arith.addf %168, %171 : vector<16x128xf32>
    %cst_71 = arith.constant 0.000000e+00 : f32
    %173 = vector.broadcast %cst_71 : f32 to vector<16x128xf32>
    %174 = arith.maximumf %172, %173 : vector<16x128xf32>
    %175 = arith.truncf %174 : vector<16x128xf32> to vector<16x128xbf16>
    %c0_72 = arith.constant 0 : index
    %c0_73 = arith.constant 0 : index
    %c0_74 = arith.constant 0 : index
    %176 = vector.load %arg12[%c0_72, %c0_73, %c0_74] : memref<1x128x32xbf16, #tpu.memory_space<vmem>>, vector<1x128x32xbf16>
    %177 = vector.shape_cast %176 : vector<1x128x32xbf16> to vector<128x32xbf16>
    %cst_75 = arith.constant dense<0.000000e+00> : vector<16x32xf32>
    %178 = tpu.matmul %175, %177, %cst_75 {dimension_numbers = #tpu.dot_dimension_numbers<[1], [0], [0], [1], [0, 0, 1, 1], [], []>} : vector<16x128xbf16>, vector<128x32xbf16>, vector<16x32xf32> -> vector<16x32xf32>
    %179 = arith.addf %165, %178 : vector<16x32xf32>
    %c0_76 = arith.constant 0 : index
    %c0_77 = arith.constant 0 : index
    %c0_78 = arith.constant 0 : index
    %180 = vector.load %arg13[%c0_76, %c0_77, %c0_78] : memref<1x1x32xf32, #tpu.memory_space<vmem>>, vector<1x1x32xf32>
    %181 = vector.shape_cast %180 : vector<1x1x32xf32> to vector<1x32xf32>
    %182 = vector.broadcast %181 : vector<1x32xf32> to vector<16x32xf32>
    %183 = arith.addf %179, %182 : vector<16x32xf32>
    %184 = arith.addf %163, %183 : vector<16x32xf32>
    %cst_79 = arith.constant dense<0.000000e+00> : vector<16xf32>
    %185 = vector.multi_reduction <add>, %184, %cst_79 [1] : vector<16x32xf32> to vector<16xf32>
    %186 = vector.shape_cast %185 : vector<16xf32> to vector<16x1xf32>
    %cst_80 = arith.constant 3.200000e+01 : f32
    %187 = vector.broadcast %cst_80 : f32 to vector<16x1xf32>
    %188 = arith.divf %186, %187 : vector<16x1xf32>
    %189 = vector.broadcast %188 : vector<16x1xf32> to vector<16x32xf32>
    %190 = arith.subf %184, %189 : vector<16x32xf32>
    %191 = arith.mulf %190, %190 : vector<16x32xf32>
    %cst_81 = arith.constant dense<0.000000e+00> : vector<16xf32>
    %192 = vector.multi_reduction <add>, %191, %cst_81 [1] : vector<16x32xf32> to vector<16xf32>
    %193 = vector.shape_cast %192 : vector<16xf32> to vector<16x1xf32>
    %cst_82 = arith.constant 3.200000e+01 : f32
    %194 = vector.broadcast %cst_82 : f32 to vector<16x1xf32>
    %195 = arith.divf %193, %194 : vector<16x1xf32>
    %196 = vector.broadcast %188 : vector<16x1xf32> to vector<16x32xf32>
    %197 = arith.subf %184, %196 : vector<16x32xf32>
    %cst_83 = arith.constant 9.99999974E-6 : f32
    %198 = vector.broadcast %cst_83 : f32 to vector<16x1xf32>
    %199 = arith.addf %195, %198 : vector<16x1xf32>
    %200 = math.rsqrt %199 : vector<16x1xf32>
    %201 = vector.broadcast %200 : vector<16x1xf32> to vector<16x32xf32>
    %202 = arith.mulf %197, %201 : vector<16x32xf32>
    %c0_84 = arith.constant 0 : index
    %c0_85 = arith.constant 0 : index
    %c0_86 = arith.constant 0 : index
    %203 = vector.load %arg14[%c0_84, %c0_85, %c0_86] : memref<1x1x32xf32, #tpu.memory_space<vmem>>, vector<1x1x32xf32>
    %204 = vector.shape_cast %203 : vector<1x1x32xf32> to vector<1x32xf32>
    %205 = vector.broadcast %204 : vector<1x32xf32> to vector<16x32xf32>
    %206 = arith.mulf %202, %205 : vector<16x32xf32>
    %c0_87 = arith.constant 0 : index
    %c0_88 = arith.constant 0 : index
    %c0_89 = arith.constant 0 : index
    %207 = vector.load %arg15[%c0_87, %c0_88, %c0_89] : memref<1x1x32xf32, #tpu.memory_space<vmem>>, vector<1x1x32xf32>
    %208 = vector.shape_cast %207 : vector<1x1x32xf32> to vector<1x32xf32>
    %209 = vector.broadcast %208 : vector<1x32xf32> to vector<16x32xf32>
    %210 = arith.addf %206, %209 : vector<16x32xf32>
    %c0_90 = arith.constant 0 : index
    %c0_91 = arith.constant 0 : index
    %211 = vector.load %arg21[%c0_90, %c0_91] : memref<16x32xf32, #tpu.memory_space<vmem>>, vector<16x32xf32>
    tpu.vector_store %arg21[%c0_90, %c0_91], %210 {strides = array<i32>} : memref<16x32xf32, #tpu.memory_space<vmem>>, vector<16x32xf32>,
    %c1_i32 = arith.constant 1 : i32
    %212 = arith.cmpi eq, %arg1, %c1_i32 : i32
    %213 = arith.extui %212 : i1 to i32
    %c0_i32_92 = arith.constant 0 : i32
    %214 = arith.cmpi ne, %213, %c0_i32_92 : i32
    scf.if %214 {
      %c7 = arith.constant 7 : index
      %c0_93 = arith.constant 0 : index
      %215 = tpu.strided_load %arg21[%c7, %c0_93] {strides = array<i32: 8, 1>} : memref<16x32xf32, #tpu.memory_space<vmem>>, vector<2x32xf32>
      %216 = arith.truncf %215 : vector<2x32xf32> to vector<2x32xbf16>
      %c0_94 = arith.constant 0 : index
      %c0_95 = arith.constant 0 : index
      %217 = vector.load %arg16[%c0_94, %c0_95] : memref<32x32xbf16, #tpu.memory_space<vmem>>, vector<32x32xbf16>
      %cst_96 = arith.constant dense<0.000000e+00> : vector<2x32xf32>
      %218 = tpu.matmul %216, %217, %cst_96 {dimension_numbers = #tpu.dot_dimension_numbers<[1], [0], [0], [1], [0, 0, 1, 1], [], []>} : vector<2x32xbf16>, vector<32x32xbf16>, vector<2x32xf32> -> vector<2x32xf32>
      %c0_97 = arith.constant 0 : index
      %c0_98 = arith.constant 0 : index
      %219 = vector.load %arg17[%c0_97, %c0_98] : memref<1x32xf32, #tpu.memory_space<vmem>>, vector<1x32xf32>
      %220 = vector.broadcast %219 : vector<1x32xf32> to vector<2x32xf32>
      %221 = arith.addf %218, %220 : vector<2x32xf32>
      %222 = arith.truncf %221 : vector<2x32xf32> to vector<2x32xbf16>
      %c0_99 = arith.constant 0 : index
      %c0_100 = arith.constant 0 : index
      %223 = vector.load %arg18[%c0_99, %c0_100] : memref<32x96xbf16, #tpu.memory_space<vmem>>, vector<32x96xbf16>
      %cst_101 = arith.constant dense<0.000000e+00> : vector<2x96xf32>
      %224 = tpu.matmul %222, %223, %cst_101 {dimension_numbers = #tpu.dot_dimension_numbers<[1], [0], [0], [1], [0, 0, 1, 1], [], []>} : vector<2x32xbf16>, vector<32x96xbf16>, vector<2x96xf32> -> vector<2x96xf32>
      %c0_102 = arith.constant 0 : index
      %c0_103 = arith.constant 0 : index
      %225 = vector.load %arg19[%c0_102, %c0_103] : memref<1x96xf32, #tpu.memory_space<vmem>>, vector<1x96xf32>
      %226 = vector.broadcast %225 : vector<1x96xf32> to vector<2x96xf32>
      %227 = arith.addf %224, %226 : vector<2x96xf32>
      %c0_104 = arith.constant 0 : index
      %c0_105 = arith.constant 0 : index
      %c0_106 = arith.constant 0 : index
      %228 = vector.load %arg20[%c0_104, %c0_105, %c0_106] : memref<2x1x96xf32, #tpu.memory_space<vmem>>, vector<2x1x96xf32>
      %229 = vector.shape_cast %228 : vector<2x1x96xf32> to vector<2x96xf32>
      %230 = vector.shape_cast %227 : vector<2x96xf32> to vector<2x1x96xf32>
      tpu.vector_store %arg20[%c0_104, %c0_105, %c0_106], %230 {strides = array<i32>} : memref<2x1x96xf32, #tpu.memory_space<vmem>>, vector<2x1x96xf32>,
    } else {
    }
    return
  }
  func.func @transform_0(%arg0: i32, %arg1: i32) -> (i32, i32, i32) {
    %c0_i32 = arith.constant 0 : i32
    %c0_i32_0 = arith.constant 0 : i32
    %c0_i32_1 = arith.constant 0 : i32
    return %arg0, %c0_i32, %c0_i32_0 : i32, i32, i32
  }
  func.func @transform_1(%arg0: i32, %arg1: i32) -> (i32, i32, i32) {
    %c0_i32 = arith.constant 0 : i32
    %c0_i32_0 = arith.constant 0 : i32
    %c0_i32_1 = arith.constant 0 : i32
    return %arg0, %c0_i32, %c0_i32_0 : i32, i32, i32
  }
  func.func @transform_2(%arg0: i32, %arg1: i32) -> (i32, i32, i32) {
    %c0_i32 = arith.constant 0 : i32
    %c0_i32_0 = arith.constant 0 : i32
    %c0_i32_1 = arith.constant 0 : i32
    return %arg1, %c0_i32, %c0_i32_0 : i32, i32, i32
  }
  func.func @transform_3(%arg0: i32, %arg1: i32) -> (i32, i32, i32) {
    %c0_i32 = arith.constant 0 : i32
    %c0_i32_0 = arith.constant 0 : i32
    %c0_i32_1 = arith.constant 0 : i32
    return %arg1, %c0_i32, %c0_i32_0 : i32, i32, i32
  }
  func.func @transform_4(%arg0: i32, %arg1: i32) -> (i32, i32, i32) {
    %c0_i32 = arith.constant 0 : i32
    %c0_i32_0 = arith.constant 0 : i32
    %c0_i32_1 = arith.constant 0 : i32
    return %arg1, %c0_i32, %c0_i32_0 : i32, i32, i32
  }
  func.func @transform_5(%arg0: i32, %arg1: i32) -> (i32, i32, i32) {
    %c0_i32 = arith.constant 0 : i32
    %c0_i32_0 = arith.constant 0 : i32
    %c0_i32_1 = arith.constant 0 : i32
    return %arg1, %c0_i32, %c0_i32_0 : i32, i32, i32
  }
  func.func @transform_6(%arg0: i32, %arg1: i32) -> (i32, i32, i32) {
    %c0_i32 = arith.constant 0 : i32
    %c0_i32_0 = arith.constant 0 : i32
    %c0_i32_1 = arith.constant 0 : i32
    return %arg1, %c0_i32, %c0_i32_0 : i32, i32, i32
  }
  func.func @transform_7(%arg0: i32, %arg1: i32) -> (i32, i32, i32) {
    %c0_i32 = arith.constant 0 : i32
    %c0_i32_0 = arith.constant 0 : i32
    %c0_i32_1 = arith.constant 0 : i32
    return %arg1, %c0_i32, %c0_i32_0 : i32, i32, i32
  }
  func.func @transform_8(%arg0: i32, %arg1: i32) -> (i32, i32, i32) {
    %c0_i32 = arith.constant 0 : i32
    %c0_i32_0 = arith.constant 0 : i32
    %c0_i32_1 = arith.constant 0 : i32
    return %arg1, %c0_i32, %c0_i32_0 : i32, i32, i32
  }
  func.func @transform_9(%arg0: i32, %arg1: i32) -> (i32, i32, i32) {
    %c0_i32 = arith.constant 0 : i32
    %c0_i32_0 = arith.constant 0 : i32
    %c0_i32_1 = arith.constant 0 : i32
    return %arg1, %c0_i32, %c0_i32_0 : i32, i32, i32
  }
  func.func @transform_10(%arg0: i32, %arg1: i32) -> (i32, i32, i32) {
    %c0_i32 = arith.constant 0 : i32
    %c0_i32_0 = arith.constant 0 : i32
    %c0_i32_1 = arith.constant 0 : i32
    return %arg1, %c0_i32, %c0_i32_0 : i32, i32, i32
  }
  func.func @transform_11(%arg0: i32, %arg1: i32) -> (i32, i32, i32) {
    %c0_i32 = arith.constant 0 : i32
    %c0_i32_0 = arith.constant 0 : i32
    %c0_i32_1 = arith.constant 0 : i32
    return %arg1, %c0_i32, %c0_i32_0 : i32, i32, i32
  }
  func.func @transform_12(%arg0: i32, %arg1: i32) -> (i32, i32, i32) {
    %c0_i32 = arith.constant 0 : i32
    %c0_i32_0 = arith.constant 0 : i32
    %c0_i32_1 = arith.constant 0 : i32
    return %arg1, %c0_i32, %c0_i32_0 : i32, i32, i32
  }
  func.func @transform_13(%arg0: i32, %arg1: i32) -> (i32, i32, i32) {
    %c0_i32 = arith.constant 0 : i32
    %c0_i32_0 = arith.constant 0 : i32
    %c0_i32_1 = arith.constant 0 : i32
    return %arg1, %c0_i32, %c0_i32_0 : i32, i32, i32
  }
  func.func @transform_14(%arg0: i32, %arg1: i32) -> (i32, i32) {
    %c0_i32 = arith.constant 0 : i32
    %c0_i32_0 = arith.constant 0 : i32
    %c0_i32_1 = arith.constant 0 : i32
    return %c0_i32, %c0_i32_0 : i32, i32
  }
  func.func @transform_15(%arg0: i32, %arg1: i32) -> (i32, i32) {
    %c0_i32 = arith.constant 0 : i32
    %c0_i32_0 = arith.constant 0 : i32
    %c0_i32_1 = arith.constant 0 : i32
    return %c0_i32, %c0_i32_0 : i32, i32
  }
  func.func @transform_16(%arg0: i32, %arg1: i32) -> (i32, i32) {
    %c0_i32 = arith.constant 0 : i32
    %c0_i32_0 = arith.constant 0 : i32
    %c0_i32_1 = arith.constant 0 : i32
    return %c0_i32, %c0_i32_0 : i32, i32
  }
  func.func @transform_17(%arg0: i32, %arg1: i32) -> (i32, i32) {
    %c0_i32 = arith.constant 0 : i32
    %c0_i32_0 = arith.constant 0 : i32
    %c0_i32_1 = arith.constant 0 : i32
    return %c0_i32, %c0_i32_0 : i32, i32
  }
  func.func @transform_18(%arg0: i32, %arg1: i32) -> (i32, i32, i32) {
    %c0_i32 = arith.constant 0 : i32
    %c0_i32_0 = arith.constant 0 : i32
    %c0_i32_1 = arith.constant 0 : i32
    return %arg0, %c0_i32, %c0_i32_0 : i32, i32, i32
  }
}

</mosaic_0001>

<bundles_post_ra>
// kernel: tpu_custom_call.1
= control target key start
LH: loop header
LB: loop body
LE: loop exit
PB: predicated region body
PF: predicated region fallthrough
CT: control target
= control target key end

     0   :  { %s3651_s0 = inlined_call_operand.vmem [shape: bf16[2,8,32], index: 0, kind: input, shape index: {}]   ;;  %s3652_s1 = inlined_call_operand.vmem [shape: f32[2,1,8], index: 1, kind: input, shape index: {}]   ;;  %s3653_s2 = inlined_call_operand.vmem [shape: bf16[2,32,96], index: 2, kind: input, shape index: {}]   ;;  %s3654_s3 = inlined_call_operand.vmem [shape: f32[2,1,96], index: 3, kind: input, shape index: {}]   ;;  %s3655_s4 = inlined_call_operand.vmem [shape: bf16[2,32,32], index: 4, kind: input, shape index: {}]   ;;  %s3656_s5 = inlined_call_operand.vmem [shape: f32[2,1,32], index: 5, kind: input, shape index: {}]   ;;  %s3657_s6 = inlined_call_operand.vmem [shape: f32[2,1,32], index: 6, kind: input, shape index: {}]   ;;  %s3658_s7 = inlined_call_operand.vmem [shape: f32[2,1,32], index: 7, kind: input, shape index: {}]   ;;  %s3659_s8 = inlined_call_operand.vmem [shape: bf16[2,32,128], index: 8, kind: input, shape index: {}]   ;;  %s3660_s9 = inlined_call_operand.vmem [shape: f32[2,1,128], index: 9, kind: input, shape index: {}]   ;;  %s3661_s10 = inlined_call_operand.vmem [shape: bf16[2,128,32], index: 10, kind: input, shape index: {}]   ;;  %s3662_s11 = inlined_call_operand.vmem [shape: f32[2,1,32], index: 11, kind: input, shape index: {}]   ;;  %s3663_s12 = inlined_call_operand.vmem [shape: f32[2,1,32], index: 12, kind: input, shape index: {}]   ;;  %s3664_s13 = inlined_call_operand.vmem [shape: f32[2,1,32], index: 13, kind: input, shape index: {}]   ;;  %s3665_s14 = inlined_call_operand.vmem [shape: bf16[32,32], index: 14, kind: input, shape index: {}]   ;;  %s3666_s15 = inlined_call_operand.vmem [shape: f32[1,32], index: 15, kind: input, shape index: {}]   ;;  %s3667_s16 = inlined_call_operand.vmem [shape: bf16[32,96], index: 16, kind: input, shape index: {}]   ;;  %s3668_s17 = inlined_call_operand.vmem [shape: f32[1,96], index: 17, kind: input, shape index: {}]   ;;  %s3669_s18 = inlined_call_operand.hbm [shape: f32[2,1,96], index: 18, kind: output, shape index: {}]  }
   0x1   :  { %3675 = sst [smem:[#allocation9_spill]] %s3651_s0 }
   0x2   :  { %3676 = sst [smem:[#allocation10_spill]] %s3652_s1 }
   0x3   :  { %3677 = sst [smem:[#allocation11_spill]] %s3653_s2 }
   0x4   :  { %3678 = sst [smem:[#allocation12_spill]] %s3655_s4 }
   0x5   :  { %3679 = sst [smem:[#allocation13_spill]] %s3665_s14 }
   0x6   :  { %3680 = sst [smem:[#allocation14_spill]] %s3666_s15 }
   0x7   :  { %3681 = sst [smem:[#allocation15_spill]] %s3667_s16 }
   0x8   :  { %3682 = sst [smem:[#allocation16_spill]] %s3668_s17 }
   0x9   :  { %3683 = sst [smem:[#allocation17_spill]] %s3669_s18 }
   0xa   :  { %23 = vsyncpa [#allocation4], 0  ;;  %s3234_s27 = smov 0   ;;  %s3236_s28 = smov 0  }
   0xb   :  { %s3238_s29 = smov 0  }
   0xc LB: > { %3684 = sst [smem:[#allocation6_spill]] %s3114_s28  ;;  %s38_s0 = sadd.s32 1, %s3114_s28  ;;  %s3118_s29 = sphi %s3238_s29, %s29_s29   ;;  %s3114_s28 = sphi %s3236_s28, %s3705_s28   ;;  %s3110_s27 = sphi %s3234_s27, %s3704_s27  }
   0xd   : > { %3685 = sst [smem:[#allocation7_spill]] %s3118_s29  ;;  %p39_p0 = scmp.ge.s32.totalorder %s38_s0, 2 }
   0xe   : > { %p2647_p1 = scmp.ge.s32.totalorder %s3118_s29, 1  ;;  %p640_p2 = scmp.lt.s32.totalorder %s3118_s29, 3 }
   0xf   : > { %s3707_s0 = smov (%p39_p0, %s38_s0), 0 }
  0x10   : > { %3686 = sst [smem:[#allocation8_spill]] %s3707_s0  ;;  %p641_p3 = pnand %p2647_p1, %p640_p2 }
  0x11   : > { %p748_p4 = scmp.lt.s32.totalorder (!%p641_p3), %s3110_s27, 1  ;;  %s3687_s24 = sld [smem:[#allocation11_spill]] (!%p641_p3) }
  0x12   : > { %644 = sbr.rel (%p641_p3) target bundleno = 4689 (0x1251), region = 92  ;;  %s3688_s4 = sld [smem:[#allocation12_spill]] (!%p641_p3) }
  0x13   : > { %p2656_p5 = scmp.ne.s32.totalorder (!%p641_p3), %s3110_s27, 0 }
  0x17   : > { %s3257_s19 = scalar_select %p748_p4, %s3110_s27, 1 }
  0x18   : > { %s3689_s18 = sld [smem:[#allocation9_spill]] (!%p2656_p5) }
  0x19   : > { %s2718_s1 = sshll.u32 %s3257_s19, 4  ;;  %s777_s26 = scalar_lea.vmem %s3660_s9, %s3257_s19 }
  0x1a   : > { %s752_s25 = scalar_lea.vmem %s3687_s24, %s2718_s1  ;;  %s3270_s0 = scalar_lea.vmem %s3688_s4, %s2718_s1 }
  0x1b   : > { %s3287_s23 = scalar_lea.vmem %s3659_s8, %s2718_s1  ;;  %s2721_s4 = sshll.u32 %s3257_s19, 6 }
  0x1c   : > { %s3297_s29 = scalar_lea.vmem %s3661_s10, %s2721_s4  ;;  %s785_s14 = scalar_lea.vmem %s3662_s11, %s3257_s19 }
  0x1d   : > { %s788_s22 = scalar_lea.vmem %s3663_s12, %s3257_s19  ;;  %s791_s16 = scalar_lea.vmem %s3664_s13, %s3257_s19 }
  0x1e   : > { %797 = sbr.rel (%p2656_p5) target bundleno = 39 (0x27), region = 96 }
  0x23   : > { %v2727_v0 = vld [vmem:[%s3689_s18] sm:$0xff]   ;;  %vm802_vm0 = vcmask 261120  }
  0x24   : > { %v2728_v1 = vunpack.c.l.bf16 %v2727_v0  ;;  %v2729_v2 = vunpack.c.h.bf16 %v2727_v0 }
  0x26   : > { %803 = vst.msk [vmem:[#allocation2] sm:$0xff] %vm802_vm0, %v2728_v1  ;;  %804 = vst.msk [vmem:[#allocation2 + $0x8] sm:$0xff] %vm802_vm0, %v2729_v2 }
  0x27 PF: > { %v3012_v3 = vld [vmem:[%s752_s25 + $0x8] sm:$0xff]   ;;  %v3120_v4 = vmov 0.0   ;;  %v3013_v5 = vld [vmem:[%s752_s25] sm:$0xff]   ;;  %vm3121_vm1 = vmmov 0   ;;  %vm831_vm2 = vcmask 261120   ;;  %s3690_s21 = scalar_lea.vmem %s3654_s3, %s3257_s19  ;;  %s3122_s28 = smov 96  }
  0x28   : > { %2791 = vmatprep.subr.bf16.mxu1 %v3120_v4  ;;  %2817 = vmatprep.subr.bf16.mxu0 %v3120_v4  ;;  %v2657_v9 = vld [vmem:[%s3690_s21] ss:$0 sm:$0xff]  ;;  %vm905_vm3 = vcmask 64512   ;;  %s3691_s20 = sld [smem:[#allocation10_spill]]  ;;  %s3123_s30 = smov 64   ;;  %vm1032_vm4 = vcmask 1043456  }
  0x29   : > { %2792 = vmatpush3.bf16.msra.mxu1 %v3012_v3  ;;  %2795 = vmatprep.mubr.msk.bf16.mxu1 %vm3121_vm1, %v3120_v4  ;;  %s3124_s24 = smov 88   ;;  %s3125_s18 = smov 120  }
  0x2a   : > { %2793 = vmatprep.subr.bf16.mxu1 %v3120_v4  ;;  %2819 = vmatprep.mubr.msk.bf16.mxu0 %vm3121_vm1, %v3120_v4  ;;  %s3126_s4 = smov 56   ;;  %s3127_s25 = smov 112  }
  0x2b   : > { %s3128_s21 = smov 80   ;;  %s3130_s15 = smov 72  }
  0x2c   : > { %s3131_s17 = smov 104   ;;  %s3132_s1 = smov 40  }
  0x2d   : > { %v3319_v6 = vld [vmem:[#allocation2] sm:$0xff]  ;;  %v3321_v7 = vld [vmem:[#allocation2 + $0x8] sm:$0xff]  ;;  %2794 = vmatpush3.bf16.msra.mxu1 %v3013_v5  ;;  %p2705_p6 = scmp.ne.s32.totalorder %s3110_s27, 1 }
  0x2e   : > { %v807_v8 = vpack.c.bf16 %v3321_v7, %v3319_v6  ;;  %2799 = vmatprep.subr.bf16.mxu1 %v3120_v4  ;;  %v3362_v26 = vld [vmem:[%s3691_s20] ss:$0 sm:$0xff]  ;;  %v3369_v33 = vld [vmem:[%s3691_s20 + $0x1] ss:$0 sm:$0xff] }
  0x30   : > { %2796 = vmatmul.mubr.msk.bf16.vlgmr.msra.gmra.mxu1 %vm831_vm2, %v807_v8 }
  0x31   : > { %2801 = vmatprep.mubr.msk.bf16.mxu1 %vm3121_vm1, %v3120_v4 }
  0xf0   : > { %v869_v10 = vpop.f32.mrf.mxu1 }
  0xf1   : > { %v870_v11 = vadd.f32 %v2657_v9, %v869_v10 }
  0xf2   : > { %v2797_v12 = vpop.f32.mrf.mxu1 }
  0xf3   : > { %v3337_v13 = vpack.c.bf16 %v870_v11, %v870_v11  ;;  %v876_v20 = vmul.f32 0.35355338, %v870_v11 }
  0xf4   : > { %v872_v14 = vpop.f32.mrf.mxu1 }
  0xf5   : > { %v873_v15 = vadd.f32 %v2657_v9, %v872_v14  ;;  %903 = vrot.lane.b32.xlu0 %v3337_v13, %s3122_s28  ;;  %v3345_v22 = vpack.c.bf16 %v876_v20, %v876_v20 }
  0xf6   : > { %v2798_v16 = vpop.f32.mrf.mxu1 }
  0xf7   : > { %v3340_v17 = vpack.c.bf16 %v873_v15, %v873_v15  ;;  %v877_v24 = vmul.f32 0.35355338, %v873_v15 }
  0xf9   : > { %953 = vrot.lane.b32.xlu0 %v3340_v17, %s3122_s28  ;;  %v3353_v25 = vpack.c.bf16 %v877_v24, %v877_v24  ;;  %s3129_s28 = smov 48  }
 0x167   : > { %v904_v18 = vpop.permute.xlu0 %903 }
 0x168   : > { %v910_v19 = vsel %vm905_vm3, %v904_v18, 0 }
 0x169   : > { %2800 = vmatpush3.bf16.xpose.msra.mxu1 %v910_v19 }
 0x16a   : > { %2805 = vmatprep.subr.bf16.mxu1 %v3120_v4 }
 0x16b   : > { %v954_v21 = vpop.permute.xlu0 %953 }
 0x16c   : > { %v959_v23 = vsel %vm905_vm3, %v954_v21, 0 }
 0x170   : > { %2802 = vmatmul.mubr.msk.bf16.vlgmr.msra.gmra.mxu1 %vm905_vm3, %v3345_v22 }
 0x171   : > { %2806 = vmatpush3.bf16.xpose.msra.mxu1 %v959_v23  ;;  %2807 = vmatprep.mubr.msk.bf16.mxu1 %vm3121_vm1, %v3120_v4 }
 0x172   : > { %2811 = vmatprep.subr.bf16.mxu1 %v3120_v4 }
 0x178   : > { %2808 = vmatmul.mubr.msk.bf16.vlgmr.msra.gmra.mxu1 %vm905_vm3, %v3353_v25 }
 0x179   : > { %2813 = vmatprep.mubr.msk.bf16.mxu1 %vm3121_vm1, %v3120_v4 }
 0x230   : > { %v946_v27 = vpop.f32.mrf.mxu1 }
 0x231   : > { %v947_v28 = vadd.f32 %v3362_v26, %v946_v27 }
 0x232   : > { %v2803_v29 = vpop.f32.mrf.mxu1 }
 0x233   : > { %v1001_v30 = vsel %vm905_vm3, %v947_v28, -inf }
 0x234   : > { %1002 = vmax.xlane.f32.xlu1 %v1001_v30  ;;  %v949_v31 = vpop.f32.mrf.mxu1 }
 0x236   : > { %v2804_v32 = vpop.f32.mrf.mxu1 }
 0x238   : > { %v995_v34 = vpop.f32.mrf.mxu1 }
 0x239   : > { %v996_v35 = vadd.f32 %v3369_v33, %v995_v34 }
 0x23a   : > { %v2809_v36 = vpop.f32.mrf.mxu1 }
 0x23b   : > { %v1004_v37 = vsel %vm905_vm3, %v996_v35, -inf }
 0x23c   : > { %1005 = vmax.xlane.f32.xlu1 %v1004_v37  ;;  %v998_v38 = vpop.f32.mrf.mxu1 }
 0x23e   : > { %v2810_v39 = vpop.f32.mrf.mxu1 }
 0x24d   : > { %1027 = vrot.lane.b32.xlu1 %v3337_v13, %s3123_s30 }
 0x251   : > { %1076 = vrot.lane.b32.xlu1 %v3340_v17, %s3123_s30  ;;  %s3692_s30 = scalar_lea.vmem %s3656_s5, %s3257_s19 }
 0x255   : > { %1128 = vrot.lane.b32.xlu1 %v3337_v13, %s3124_s24 }
 0x2bd   : > { %v1003_v40 = vpop.xlane.xlu1 %1002 }
 0x2be   : > { %v1007_v41 = vsub.f32 %v947_v28, %v1003_v40 }
 0x2c0   : > { %v1009_v42 = vmul.f32 1.442695, %v1007_v41 }
 0x2c2   : > { %3024 = vpow2.f32 %v1009_v42 }
 0x2c5   : > { %v1006_v43 = vpop.xlane.xlu1 %1005 }
 0x2c6   : > { %v1008_v44 = vsub.f32 %v996_v35, %v1006_v43 }
 0x2c8   : > { %v1011_v45 = vmul.f32 1.442695, %v1008_v44 }
 0x2c9   : > { %v1028_v46 = vpop.permute.xlu1 %1027 }
 0x2ca   : > { %3026 = vpow2.f32 %v1011_v45  ;;  %v1034_v47 = vsel %vm1032_vm4, %v1028_v46, 0 }
 0x2cb   : > { %2812 = vmatpush3.bf16.msra.mxu1 %v1034_v47 }
 0x2cc   : > { %2823 = vmatprep.subr.bf16.mxu1 %v3120_v4 }
 0x2cd   : > { %v1077_v48 = vpop.permute.xlu1 %1076 }
 0x2ce   : > { %v1082_v49 = vsel %vm1032_vm4, %v1077_v48, 0 }
 0x2cf   : > { %v3025_v50 = vpop.eup %3024  ;;  %2818 = vmatpush3.bf16.msra.mxu0 %v1082_v49 }
 0x2d0   : > { %v1013_v51 = vsel %vm905_vm3, %v3025_v50, 0.0  ;;  %2829 = vmatprep.subr.bf16.mxu0 %v3120_v4 }
 0x2d1   : > { %1014 = vadd.xlane.f32.xlu0 %v1013_v51  ;;  %v1129_v56 = vpop.permute.xlu1 %1128 }
 0x2d2   : > { %v1134_v62 = vsel %vm905_vm3, %v1129_v56, 0 }
 0x2d7   : > { %v3027_v52 = vpop.eup %3026 }
 0x2d8   : > { %v1016_v53 = vsel %vm905_vm3, %v3027_v52, 0.0 }
 0x2d9   : > { %1017 = vadd.xlane.f32.xlu1 %v1016_v53 }
 0x2e7   : > { %1126 = vrot.lane.b32.xlu0 %v3345_v22, %s3125_s18 }
 0x2ea   : > { %1178 = vrot.lane.b32.xlu1 %v3340_v17, %s3124_s24 }
 0x2ee   : > { %1176 = vrot.lane.b32.xlu1 %v3353_v25, %s3125_s18  ;;  %s3693_s18 = scalar_lea.vmem %s3657_s6, %s3257_s19 }
 0x35a   : > { %v1015_v54 = vpop.xlane.xlu0 %1014 }
 0x35b   : > { %v1019_v55 = vmax.f32 %v1015_v54, 1e-30 }
 0x35d   : > { %3028 = vrcp.f32 %v1019_v55 }
 0x35e   : > { %v1127_v3 = vpop.permute.xlu0 %1126 }
 0x362   : > { %v1018_v57 = vpop.xlane.xlu1 %1017 }
 0x363   : > { %v1020_v58 = vmax.f32 %v1018_v57, 1e-30 }
 0x365   : > { %3030 = vrcp.f32 %v1020_v58  ;;  %v1125_v58 = vld [vmem:[%s3270_s0] sm:$0xf] }
 0x366   : > { %v1179_v1 = vpop.permute.xlu1 %1178 }
 0x367   : > { %v1184_v5 = vsel %vm905_vm3, %v1179_v1, 0 }
 0x36a   : > { %v3029_v59 = vpop.eup %3028  ;;  %v1177_v8 = vpop.permute.xlu1 %1176 }
 0x36b   : > { %v1023_v60 = vmul.f32 %v3029_v59, %v3025_v50 }
 0x36d   : > { %v1025_v61 = vpack.c.bf16 %v1023_v60, %v1023_v60 }
 0x36f   : > { %2814 = vmatmul.mubr.msk.bf16.vlgmr.msra.gmra.mxu1 %vm905_vm3, %v1025_v61  ;;  %v1401_v61 = vsel %vm1032_vm4, %v1125_v58, 0 }
 0x370   : > { %2824 = vmatpush3.bf16.xpose.msra.mxu1 %v1134_v62  ;;  %2825 = vmatprep.mubr.msk.bf16.mxu1 %vm3121_vm1, %v3120_v4 }
 0x371   : > { %2835 = vmatprep.subr.bf16.mxu1 %v3120_v4 }
 0x372   : > { %v3031_v63 = vpop.eup %3030 }
 0x373   : > { %v1024_v0 = vmul.f32 %v3031_v63, %v3027_v52 }
 0x375   : > { %v1026_v2 = vpack.c.bf16 %v1024_v0, %v1024_v0 }
 0x377   : > { %2820 = vmatmul.mubr.msk.bf16.vlgmr.msra.gmra.mxu0 %vm905_vm3, %v1026_v2  ;;  %2826 = vmatmul.mubr.msk.bf16.vlgmr.msra.gmra.mxu1 %vm905_vm3, %v1127_v3  ;;  %v1349_v2 = vld [vmem:[%s3270_s0 + $0x4] sm:$0xf] }
 0x378   : > { %2830 = vmatpush3.bf16.xpose.msra.mxu0 %v1184_v5  ;;  %2831 = vmatprep.mubr.msk.bf16.mxu0 %vm3121_vm1, %v3120_v4  ;;  %v1354_v3 = vsel %vm1032_vm4, %v1349_v2, 0 }
 0x379   : > { %2841 = vmatprep.subr.bf16.mxu0 %v3120_v4  ;;  %2837 = vmatprep.mubr.msk.bf16.mxu1 %vm3121_vm1, %v3120_v4 }
 0x37f   : > { %2832 = vmatmul.mubr.msk.bf16.vlgmr.msra.gmra.mxu0 %vm905_vm3, %v1177_v8 }
 0x380   : > { %2843 = vmatprep.mubr.msk.bf16.mxu0 %vm3121_vm1, %v3120_v4 }
 0x42f   : > { %v3401_v9 = vpop.f32.mrf.mxu1 }
 0x431   : > { %v2815_v10 = vpop.f32.mrf.mxu1 }
 0x433   : > { %v1073_v11 = vpop.f32.mrf.mxu1 }
 0x435   : > { %v2816_v12 = vpop.f32.mrf.mxu1 }
 0x437   : > { %v3403_v14 = vpop.f32.mrf.mxu0  ;;  %v1170_v15 = vpop.f32.mrf.mxu1 }
 0x438   : > { %v1124_v16 = vpack.c.bf16 %v3403_v14, %v3401_v9  ;;  %v1171_v18 = vadd.f32 %v3362_v26, %v1170_v15 }
 0x439   : > { %v2821_v19 = vpop.f32.mrf.mxu0  ;;  %v2827_v20 = vpop.f32.mrf.mxu1 }
 0x43a   : > { %v1226_v21 = vsel %vm905_vm3, %v1171_v18, -inf }
 0x43b   : > { %v1121_v23 = vpop.f32.mrf.mxu0  ;;  %1227 = vmax.xlane.f32.xlu1 %v1226_v21  ;;  %v1173_v24 = vpop.f32.mrf.mxu1 }
 0x43d   : > { %v2822_v27 = vpop.f32.mrf.mxu0  ;;  %v2828_v28 = vpop.f32.mrf.mxu1 }
 0x43f   : > { %v1220_v29 = vpop.f32.mrf.mxu0 }
 0x440   : > { %v1221_v30 = vadd.f32 %v3369_v33, %v1220_v29 }
 0x441   : > { %v2833_v31 = vpop.f32.mrf.mxu0 }
 0x442   : > { %v1229_v32 = vsel %vm905_vm3, %v1221_v30, -inf }
 0x443   : > { %1230 = vmax.xlane.f32.xlu0 %v1229_v32  ;;  %v1223_v34 = vpop.f32.mrf.mxu0 }
 0x445   : > { %v2834_v35 = vpop.f32.mrf.mxu0 }
 0x459   : > { %1300 = vrot.lane.b32.xlu0 %v3340_v17, %s3126_s4 }
 0x45d   : > { %1444 = vrot.lane.b32.xlu0 %v3345_v22, %s3127_s25 }
 0x4c4   : > { %v1228_v36 = vpop.xlane.xlu1 %1227 }
 0x4c5   : > { %v1232_v37 = vsub.f32 %v1171_v18, %v1228_v36 }
 0x4c7   : > { %v1234_v38 = vmul.f32 1.442695, %v1232_v37 }
 0x4c9   : > { %3032 = vpow2.f32 %v1234_v38 }
 0x4cc   : > { %v1231_v39 = vpop.xlane.xlu0 %1230 }
 0x4cd   : > { %v1233_v40 = vsub.f32 %v1221_v30, %v1231_v39 }
 0x4cf   : > { %v1236_v41 = vmul.f32 1.442695, %v1233_v40 }
 0x4d0   : > { %v1301_v42 = vpop.permute.xlu0 %1300 }
 0x4d1   : > { %3034 = vpow2.f32 %v1236_v41  ;;  %v1306_v43 = vsel %vm1032_vm4, %v1301_v42, 0 }
 0x4d2   : > { %2842 = vmatpush3.bf16.msra.mxu0 %v1306_v43 }
 0x4d3   : > { %2853 = vmatprep.subr.bf16.mxu0 %v3120_v4 }
 0x4d4   : > { %v1445_v20 = vpop.permute.xlu0 %1444 }
 0x4d6   : > { %v3033_v44 = vpop.eup %3032 }
 0x4d7   : > { %v1238_v45 = vsel %vm905_vm3, %v3033_v44, 0.0 }
 0x4d8   : > { %1239 = vadd.xlane.f32.xlu1 %v1238_v45 }
 0x4de   : > { %v3035_v46 = vpop.eup %3034 }
 0x4df   : > { %v1241_v47 = vsel %vm905_vm3, %v3035_v46, 0.0 }
 0x4e0   : > { %1242 = vadd.xlane.f32.xlu1 %v1241_v47 }
 0x4f1   : > { %1252 = vrot.lane.b32.xlu1 %v3337_v13, %s3126_s4 }
 0x4f5   : > { %1446 = vrot.lane.b32.xlu1 %v3337_v13, %s3128_s21 }
 0x4f9   : > { %1496 = vrot.lane.b32.xlu1 %v3340_v17, %s3128_s21  ;;  %s3694_s21 = scalar_lea.vmem %s3658_s7, %s3257_s19 }
 0x4fd   : > { %1494 = vrot.lane.b32.xlu1 %v3353_v25, %s3127_s25 }
 0x561   : > { %v1240_v48 = vpop.xlane.xlu1 %1239 }
 0x562   : > { %v1244_v49 = vmax.f32 %v1240_v48, 1e-30 }
 0x564   : > { %3036 = vrcp.f32 %v1244_v49 }
 0x569   : > { %v1243_v50 = vpop.xlane.xlu1 %1242 }
 0x56a   : > { %v1245_v51 = vmax.f32 %v1243_v50, 1e-30 }
 0x56c   : > { %3038 = vrcp.f32 %v1245_v51 }
 0x56d   : > { %v1253_v52 = vpop.permute.xlu1 %1252 }
 0x56e   : > { %v1258_v53 = vsel %vm1032_vm4, %v1253_v52, 0 }
 0x56f   : > { %2836 = vmatpush3.bf16.msra.mxu1 %v1258_v53 }
 0x570   : > { %2847 = vmatprep.subr.bf16.mxu1 %v3120_v4 }
 0x571   : > { %v3037_v54 = vpop.eup %3036  ;;  %v1447_v62 = vpop.permute.xlu1 %1446 }
 0x572   : > { %v1248_v55 = vmul.f32 %v3037_v54, %v3033_v44  ;;  %v1452_v15 = vsel %vm905_vm3, %v1447_v62, 0 }
 0x574   : > { %v1250_v56 = vpack.c.bf16 %v1248_v55, %v1248_v55 }
 0x575   : > { %v1497_v63 = vpop.permute.xlu1 %1496 }
 0x576   : > { %2838 = vmatmul.mubr.msk.bf16.vlgmr.msra.gmra.mxu1 %vm905_vm3, %v1250_v56  ;;  %v1502_v0 = vsel %vm905_vm3, %v1497_v63, 0 }
 0x577   : > { %2849 = vmatprep.mubr.msk.bf16.mxu1 %vm3121_vm1, %v3120_v4  ;;  %2848 = vmatpush3.bf16.msra.mxu1 %v1354_v3 }
 0x578   : > { %2859 = vmatprep.subr.bf16.mxu1 %v3120_v4 }
 0x579   : > { %v3039_v57 = vpop.eup %3038  ;;  %v1495_v1 = vpop.permute.xlu1 %1494 }
 0x57a   : > { %v1249_v59 = vmul.f32 %v3039_v57, %v3035_v46 }
 0x57c   : > { %v1251_v60 = vpack.c.bf16 %v1249_v59, %v1249_v59 }
 0x57e   : > { %2844 = vmatmul.mubr.msk.bf16.vlgmr.msra.gmra.mxu0 %vm905_vm3, %v1251_v60 }
 0x57f   : > { %2854 = vmatpush3.bf16.msra.mxu0 %v1401_v61  ;;  %2855 = vmatprep.mubr.msk.bf16.mxu0 %vm3121_vm1, %v3120_v4 }
 0x580   : > { %2865 = vmatprep.subr.bf16.mxu0 %v3120_v4 }
 0x586   : > { %2856 = vmatmul.mubr.msk.bf16.vlgmr.msra.gmra.mxu0 %vm905_vm3, %v1124_v16 }
 0x587   : > { %2866 = vmatpush3.bf16.xpose.msra.mxu0 %v1502_v0  ;;  %2867 = vmatprep.mubr.msk.bf16.mxu0 %vm3121_vm1, %v3120_v4 }
 0x588   : > { %2877 = vmatprep.subr.bf16.mxu0 %v3120_v4 }
 0x58e   : > { %2868 = vmatmul.mubr.msk.bf16.vlgmr.msra.gmra.mxu0 %vm905_vm3, %v1495_v1 }
 0x58f   : > { %2879 = vmatprep.mubr.msk.bf16.mxu0 %vm3121_vm1, %v3120_v4 }
 0x636   : > { %v1294_v5 = vpop.f32.mrf.mxu1 }
 0x638   : > { %v2839_v8 = vpop.f32.mrf.mxu1 }
 0x639   : > { %v1667_v8 = vld [vmem:[%s3270_s0 + $0x8] sm:$0xf] }
 0x63a   : > { %v1297_v9 = vpop.f32.mrf.mxu1 }
 0x63b   : > { %v1672_v9 = vsel %vm1032_vm4, %v1667_v8, 0 }
 0x63c   : > { %v2840_v10 = vpop.f32.mrf.mxu1 }
 0x63e   : > { %v1342_v11 = vpop.f32.mrf.mxu0 }
 0x63f   : > { %v1348_v12 = vpack.c.bf16 %v1342_v11, %v1294_v5 }
 0x640   : > { %v2845_v14 = vpop.f32.mrf.mxu0 }
 0x641   : > { %2850 = vmatmul.mubr.msk.bf16.vlgmr.msra.gmra.mxu1 %vm905_vm3, %v1348_v12 }
 0x642   : > { %2860 = vmatpush3.bf16.xpose.msra.mxu1 %v1452_v15  ;;  %v1345_v16 = vpop.f32.mrf.mxu0  ;;  %2861 = vmatprep.mubr.msk.bf16.mxu1 %vm3121_vm1, %v3120_v4 }
 0x643   : > { %2871 = vmatprep.subr.bf16.mxu1 %v3120_v4 }
 0x644   : > { %v2846_v18 = vpop.f32.mrf.mxu0 }
 0x646   : > { %v3451_v19 = vpop.f32.mrf.mxu0 }
 0x648   : > { %v2857_v21 = vpop.f32.mrf.mxu0 }
 0x649   : > { %2862 = vmatmul.mubr.msk.bf16.vlgmr.msra.gmra.mxu1 %vm905_vm3, %v1445_v20 }
 0x64a   : > { %v3454_v23 = vpop.f32.mrf.mxu0  ;;  %2873 = vmatprep.mubr.msk.bf16.mxu1 %vm3121_vm1, %v3120_v4 }
 0x64c   : > { %v2858_v24 = vpop.f32.mrf.mxu0 }
 0x64e   : > { %v1538_v27 = vpop.f32.mrf.mxu0 }
 0x64f   : > { %v1539_v28 = vadd.f32 %v3369_v33, %v1538_v27 }
 0x650   : > { %v2869_v29 = vpop.f32.mrf.mxu0 }
 0x651   : > { %v1547_v30 = vsel %vm905_vm3, %v1539_v28, -inf }
 0x652   : > { %1548 = vmax.xlane.f32.xlu1 %v1547_v30  ;;  %v1541_v31 = vpop.f32.mrf.mxu0 }
 0x654   : > { %v2870_v32 = vpop.f32.mrf.mxu0 }
 0x663   : > { %1570 = vrot.lane.b32.xlu1 %v3337_v13, %s3129_s28 }
 0x667   : > { %1719 = vrot.lane.b32.xlu1 %v3337_v13, %s3130_s15 }
 0x66b   : > { %1769 = vrot.lane.b32.xlu1 %v3340_v17, %s3130_s15 }
 0x66f   : > { %1767 = vrot.lane.b32.xlu1 %v3353_v25, %s3131_s17 }
 0x6db   : > { %v1549_v34 = vpop.xlane.xlu1 %1548 }
 0x6dc   : > { %v1551_v37 = vsub.f32 %v1539_v28, %v1549_v34 }
 0x6de   : > { %v1554_v38 = vmul.f32 1.442695, %v1551_v37 }
 0x6df   : > { %v1571_v35 = vpop.permute.xlu1 %1570 }
 0x6e0   : > { %v1576_v36 = vsel %vm1032_vm4, %v1571_v35, 0  ;;  %3040 = vpow2.f32 %v1554_v38 }
 0x6e1   : > { %2872 = vmatpush3.bf16.msra.mxu1 %v1576_v36 }
 0x6e2   : > { %2883 = vmatprep.subr.bf16.mxu1 %v3120_v4 }
 0x6e3   : > { %v1720_v63 = vpop.permute.xlu1 %1719 }
 0x6e4   : > { %v1725_v1 = vsel %vm905_vm3, %v1720_v63, 0 }
 0x6e7   : > { %v1770_v20 = vpop.permute.xlu1 %1769 }
 0x6e8   : > { %v1775_v31 = vsel %vm905_vm3, %v1770_v20, 0  ;;  %v2687_v20 = vld [vmem:[%s3692_s30] ss:$0 sm:$0xff]  ;;  %s3695_s30 = sld [smem:[#allocation13_spill]] (!%p2705_p6) }
 0x6eb   : > { %v1768_v34 = vpop.permute.xlu1 %1767 }
 0x6ed   : > { %v3041_v46 = vpop.eup %3040 }
 0x6ee   : > { %v1559_v49 = vsel %vm905_vm3, %v3041_v46, 0.0 }
 0x701   : > { %v3468_v39 = vpop.f32.mrf.mxu1 }
 0x703   : > { %v2851_v40 = vpop.f32.mrf.mxu1 }
 0x705   : > { %v3470_v41 = vpop.f32.mrf.mxu1 }
 0x707   : > { %v2852_v42 = vpop.f32.mrf.mxu1 }
 0x708   : > { %v1438_v42 = vadd.f32 %v3451_v19, %v3468_v39 }
 0x709   : > { %v1488_v43 = vpop.f32.mrf.mxu1 }
 0x70a   : > { %v1489_v44 = vadd.f32 %v3362_v26, %v1488_v43 }
 0x70b   : > { %v2863_v25 = vpop.f32.mrf.mxu1 }
 0x70c   : > { %v1544_v45 = vsel %vm905_vm3, %v1489_v44, -inf }
 0x70d   : > { %1545 = vmax.xlane.f32.xlu0 %v1544_v45  ;;  %v1491_v47 = vpop.f32.mrf.mxu1  ;;  %v1441_v45 = vadd.f32 %v3454_v23, %v3470_v41 }
 0x70f   : > { %v2864_v48 = vpop.f32.mrf.mxu1 }
 0x711   : > { %1560 = vadd.xlane.f32.xlu0 %v1559_v49 }
 0x796   : > { %v1546_v50 = vpop.xlane.xlu0 %1545 }
 0x797   : > { %v1550_v51 = vsub.f32 %v1489_v44, %v1546_v50 }
 0x799   : > { %v1552_v52 = vmul.f32 1.442695, %v1550_v51 }
 0x79a   : > { %v1561_v55 = vpop.xlane.xlu0 %1560 }
 0x79b   : > { %3042 = vpow2.f32 %v1552_v52  ;;  %v1563_v56 = vmax.f32 %v1561_v55, 1e-30 }
 0x79d   : > { %3044 = vrcp.f32 %v1563_v56 }
 0x7a8   : > { %v3043_v53 = vpop.eup %3042 }
 0x7a9   : > { %v1556_v54 = vsel %vm905_vm3, %v3043_v53, 0.0 }
 0x7aa   : > { %1557 = vadd.xlane.f32.xlu0 %v1556_v54  ;;  %v3045_v57 = vpop.eup %3044 }
 0x7ab   : > { %v1567_v60 = vmul.f32 %v3045_v57, %v3041_v46 }
 0x7ad   : > { %v1569_v0 = vpack.c.bf16 %v1567_v60, %v1567_v60 }
 0x7c0   : > { %1618 = vrot.lane.b32.xlu0 %v3340_v17, %s3129_s28  ;;  %s3697_s28 = sld [smem:[#allocation14_spill]] (!%p2705_p6) }
 0x7c4   : > { %1717 = vrot.lane.b32.xlu0 %v3345_v22, %s3131_s17 }
 0x833   : > { %v1558_v58 = vpop.xlane.xlu0 %1557 }
 0x834   : > { %v1562_v59 = vmax.f32 %v1558_v58, 1e-30 }
 0x836   : > { %3046 = vrcp.f32 %v1562_v59 }
 0x837   : > { %v1619_v61 = vpop.permute.xlu0 %1618 }
 0x838   : > { %v1624_v62 = vsel %vm1032_vm4, %v1619_v61, 0  ;;  %v1940_v61 = vld [vmem:[%s3270_s0 + $0xc] sm:$0xf] }
 0x839   : > { %2878 = vmatpush3.bf16.msra.mxu0 %v1624_v62  ;;  %v1945_v62 = vsel %vm1032_vm4, %v1940_v61, 0 }
 0x83a   : > { %2889 = vmatprep.subr.bf16.mxu0 %v3120_v4 }
 0x83b   : > { %v1718_v2 = vpop.permute.xlu0 %1717 }
 0x83c   : > { %2880 = vmatmul.mubr.msk.bf16.vlgmr.msra.gmra.mxu0 %vm905_vm3, %v1569_v0 }
 0x83d   : > { %2890 = vmatpush3.bf16.xpose.msra.mxu0 %v1725_v1  ;;  %2891 = vmatprep.mubr.msk.bf16.mxu0 %vm3121_vm1, %v3120_v4 }
 0x83e   : > { %2901 = vmatprep.subr.bf16.mxu0 %v3120_v4 }
 0x843   : > { %v3047_v22 = vpop.eup %3046 }
 0x844   : > { %2892 = vmatmul.mubr.msk.bf16.vlgmr.msra.gmra.mxu0 %vm905_vm3, %v1718_v2  ;;  %v1566_v3 = vmul.f32 %v3047_v22, %v3043_v53 }
 0x845   : > { %2903 = vmatprep.mubr.msk.bf16.mxu0 %vm3121_vm1, %v3120_v4 }
 0x846   : > { %v1568_v5 = vpack.c.bf16 %v1566_v3, %v1566_v3 }
 0x848   : > { %2874 = vmatmul.mubr.msk.bf16.vlgmr.msra.gmra.mxu1 %vm905_vm3, %v1568_v5 }
 0x849   : > { %2885 = vmatprep.mubr.msk.bf16.mxu1 %vm3121_vm1, %v3120_v4  ;;  %2884 = vmatpush3.bf16.msra.mxu1 %v1672_v9 }
 0x84a   : > { %2895 = vmatprep.subr.bf16.mxu1 %v3120_v4 }
 0x8fc   : > { %v1660_v10 = vpop.f32.mrf.mxu0 }
 0x8fe   : > { %v2881_v11 = vpop.f32.mrf.mxu0 }
 0x900   : > { %v1663_v12 = vpop.f32.mrf.mxu0 }
 0x902   : > { %v2882_v14 = vpop.f32.mrf.mxu0 }
 0x904   : > { %v1761_v15 = vpop.f32.mrf.mxu0 }
 0x905   : > { %v1762_v16 = vadd.f32 %v3362_v26, %v1761_v15 }
 0x906   : > { %v2893_v18 = vpop.f32.mrf.mxu0 }
 0x907   : > { %v1817_v21 = vsel %vm905_vm3, %v1762_v16, -inf }
 0x908   : > { %1818 = vmax.xlane.f32.xlu0 %v1817_v21  ;;  %v1612_v24 = vpop.f32.mrf.mxu1  ;;  %v1764_v27 = vpop.f32.mrf.mxu0 }
 0x909   : > { %v1666_v28 = vpack.c.bf16 %v1660_v10, %v1612_v24 }
 0x90a   : > { %v2875_v29 = vpop.f32.mrf.mxu1  ;;  %v2894_v30 = vpop.f32.mrf.mxu0 }
 0x90b   : > { %2886 = vmatmul.mubr.msk.bf16.vlgmr.msra.gmra.mxu1 %vm905_vm3, %v1666_v28 }
 0x90c   : > { %2896 = vmatpush3.bf16.xpose.msra.mxu1 %v1775_v31  ;;  %v1615_v32 = vpop.f32.mrf.mxu1  ;;  %2897 = vmatprep.mubr.msk.bf16.mxu1 %vm3121_vm1, %v3120_v4 }
 0x90d   : > { %2907 = vmatprep.subr.bf16.mxu1 %v3120_v4 }
 0x90e   : > { %v2876_v26 = vpop.f32.mrf.mxu1 }
 0x913   : > { %2898 = vmatmul.mubr.msk.bf16.vlgmr.msra.gmra.mxu1 %vm905_vm3, %v1768_v34 }
 0x914   : > { %2909 = vmatprep.mubr.msk.bf16.mxu1 %vm3121_vm1, %v3120_v4 }
 0x991   : > { %v1819_v35 = vpop.xlane.xlu0 %1818 }
 0x992   : > { %v1823_v36 = vsub.f32 %v1762_v16, %v1819_v35 }
 0x994   : > { %v1825_v37 = vmul.f32 1.442695, %v1823_v36 }
 0x996   : > { %3048 = vpow2.f32 %v1825_v37 }
 0x9a3   : > { %v3049_v38 = vpop.eup %3048 }
 0x9a4   : > { %v1829_v40 = vsel %vm905_vm3, %v3049_v38, 0.0 }
 0x9a5   : > { %1830 = vadd.xlane.f32.xlu0 %v1829_v40 }
 0x9cb   : > { %v1708_v43 = vpop.f32.mrf.mxu1 }
 0x9cc   : > { %v3509_v44 = vadd.f32 %v1708_v43, %v1438_v42 }
 0x9cd   : > { %v2887_v25 = vpop.f32.mrf.mxu1 }
 0x9cf   : > { %v1711_v46 = vpop.f32.mrf.mxu1 }
 0x9d0   : > { %v3513_v47 = vadd.f32 %v1711_v46, %v1441_v45  ;;  %v3014_v45 = vld [vmem:[%s3287_s23 + $0x8] sm:$0xff]   ;;  %v3015_v46 = vld [vmem:[%s3287_s23] sm:$0xff]  }
 0x9d1   : > { %v2888_v48 = vpop.f32.mrf.mxu1 }
 0x9d2   : > { %v3017_v48 = vld [vmem:[%s3297_s29 + $0x30] sm:$0xff]  }
 0x9d3   : > { %v1811_v49 = vpop.f32.mrf.mxu1 }
 0x9d4   : > { %v1812_v50 = vadd.f32 %v3369_v33, %v1811_v49  ;;  %v3018_v49 = vld [vmem:[%s3297_s29 + $0x28] sm:$0xff]  }
 0x9d5   : > { %v2899_v51 = vpop.f32.mrf.mxu1 }
 0x9d6   : > { %v1820_v52 = vsel %vm905_vm3, %v1812_v50, -inf  ;;  %v3020_v51 = vld [vmem:[%s3297_s29 + $0x18] sm:$0xff]  }
 0x9d7   : > { %1821 = vmax.xlane.f32.xlu1 %v1820_v52  ;;  %v1814_v53 = vpop.f32.mrf.mxu1 }
 0x9d9   : > { %v2900_v19 = vpop.f32.mrf.mxu1 }
 0x9e8   : > { %1843 = vrot.lane.b32.xlu1 %v3337_v13, %s3132_s1 }
 0xa2e   : > { %v1831_v39 = vpop.xlane.xlu0 %1830 }
 0xa2f   : > { %v1835_v54 = vmax.f32 %v1831_v39, 1e-30 }
 0xa31   : > { %3050 = vrcp.f32 %v1835_v54 }
 0xa3e   : > { %v3051_v23 = vpop.eup %3050 }
 0xa3f   : > { %v1839_v57 = vmul.f32 %v3051_v23, %v3049_v38 }
 0xa41   : > { %v1841_v59 = vpack.c.bf16 %v1839_v57, %v1839_v57 }
 0xa60   : > { %v1822_v41 = vpop.xlane.xlu1 %1821 }
 0xa61   : > { %v1824_v55 = vsub.f32 %v1812_v50, %v1822_v41  ;;  %v3019_v50 = vld [vmem:[%s3297_s29 + $0x20] sm:$0xff]  }
 0xa63   : > { %v1827_v56 = vmul.f32 1.442695, %v1824_v55 }
 0xa64   : > { %v1844_v58 = vpop.permute.xlu1 %1843 }
 0xa65   : > { %3052 = vpow2.f32 %v1827_v56  ;;  %v1849_v33 = vsel %vm1032_vm4, %v1844_v58, 0  ;;  %v2688_v56 = vld [vmem:[%s3693_s18] ss:$0 sm:$0xff]  ;;  %s3696_s18 = sld [smem:[#allocation15_spill]] (!%p2705_p6) }
 0xa66   : > { %2902 = vmatpush3.bf16.msra.mxu0 %v1849_v33 }
 0xa67   : > { %2913 = vmatprep.subr.bf16.mxu0 %v3120_v4 }
 0xa69   : > { %2904 = vmatmul.mubr.msk.bf16.vlgmr.msra.gmra.mxu0 %vm905_vm3, %v1841_v59  ;;  %v2689_v59 = vld [vmem:[%s3694_s21] ss:$0 sm:$0xff] }
 0xa6a   : > { %2915 = vmatprep.mubr.msk.bf16.mxu0 %vm3121_vm1, %v3120_v4  ;;  %2914 = vmatpush3.bf16.msra.mxu0 %v1945_v62 }
 0xa6b   : > { %2927 = vmatprep.subr.bf16.mxu0 %v3120_v4 }
 0xa72   : > { %v3053_v13 = vpop.eup %3052 }
 0xa73   : > { %v1832_v60 = vsel %vm905_vm3, %v3053_v13, 0.0 }
 0xa74   : > { %1833 = vadd.xlane.f32.xlu0 %v1832_v60 }
 0xa8a   : > { %1891 = vrot.lane.b32.xlu0 %v3340_v17, %s3132_s1  ;;  %s3698_s1 = sld [smem:[#allocation16_spill]] (!%p2705_p6) }
 0xafd   : > { %v1834_v63 = vpop.xlane.xlu0 %1833 }
 0xafe   : > { %v1836_v0 = vmax.f32 %v1834_v63, 1e-30  ;;  %v3021_v63 = vld [vmem:[%s3297_s29 + $0x10] sm:$0xff]  }
 0xb00   : > { %3054 = vrcp.f32 %v1836_v0  ;;  %v3022_v0 = vld [vmem:[%s3297_s29 + $0x8] sm:$0xff]  }
 0xb01   : > { %v1892_v1 = vpop.permute.xlu0 %1891 }
 0xb02   : > { %v1897_v22 = vsel %vm1032_vm4, %v1892_v1, 0  ;;  %v3023_v1 = vld [vmem:[%s3297_s29] sm:$0xff]  }
 0xb03   : > { %2908 = vmatpush3.bf16.msra.mxu1 %v1897_v22  ;;  %v2690_v22 = vld [vmem:[%s777_s26] ss:$0 sm:$0xff] }
 0xb04   : > { %2919 = vmatprep.subr.bf16.mxu1 %v3120_v4 }
 0xb0d   : > { %v3055_v2 = vpop.eup %3054 }
 0xb0e   : > { %v1840_v3 = vmul.f32 %v3055_v2, %v3053_v13 }
 0xb10   : > { %v1842_v5 = vpack.c.bf16 %v1840_v3, %v1840_v3 }
 0xb12   : > { %2910 = vmatmul.mubr.msk.bf16.vlgmr.msra.gmra.mxu1 %vm905_vm3, %v1842_v5 }
 0xb13   : > { %2923 = vmatprep.mubr.msk.bf16.mxu1 %vm3121_vm1, %v3120_v4  ;;  %2920 = vmatpush3.bf16.msra.mxu1 %v3014_v45 }
 0xb14   : > { %2921 = vmatprep.subr.bf16.mxu1 %v3120_v4 }
 0xb17   : > { %2922 = vmatpush3.bf16.msra.mxu1 %v3015_v46  ;;  %v2703_v46 = vld [vmem:[%s788_s22] ss:$0 sm:$0xff] }
 0xb29   : > { %v1885_v17 = vpop.f32.mrf.mxu0 }
 0xb2b   : > { %v2905_v8 = vpop.f32.mrf.mxu0 }
 0xb2d   : > { %v1888_v9 = vpop.f32.mrf.mxu0 }
 0xb2f   : > { %v2906_v10 = vpop.f32.mrf.mxu0 }
 0xbd2   : > { %v1933_v11 = vpop.f32.mrf.mxu1 }
 0xbd3   : > { %v1939_v12 = vpack.c.bf16 %v1933_v11, %v1885_v17 }
 0xbd4   : > { %v2911_v14 = vpop.f32.mrf.mxu1 }
 0xbd5   : > { %2916 = vmatmul.mubr.msk.bf16.vlgmr.msra.gmra.mxu0 %vm905_vm3, %v1939_v12 }
 0xbd6   : > { %v1936_v15 = vpop.f32.mrf.mxu1  ;;  %2943 = vmatprep.mubr.msk.bf16.mxu0 %vm3121_vm1, %v3120_v4 }
 0xbd8   : > { %v2912_v16 = vpop.f32.mrf.mxu1 }
 0xc95   : > { %v1981_v18 = vpop.f32.mrf.mxu0 }
 0xc96   : > { %v1988_v21 = vadd.f32 %v1981_v18, %v3509_v44 }
 0xc97   : > { %v2917_v24 = vpop.f32.mrf.mxu0 }
 0xc98   : > { %v1997_v27 = vadd.f32 %v2687_v20, %v1988_v21 }
 0xc99   : > { %v1984_v28 = vpop.f32.mrf.mxu0 }
 0xc9a   : > { %v1989_v29 = vadd.f32 %v1984_v28, %v3513_v47  ;;  %v1999_v30 = vadd.f32 %v1997_v27, %v3319_v6  ;;  %v3016_v47 = vld [vmem:[%s3297_s29 + $0x38] sm:$0xff]  }
 0xc9b   : > { %v2918_v31 = vpop.f32.mrf.mxu0  ;;  %2928 = vmatpush3.bf16.msra.mxu0 %v3016_v47 }
 0xc9c   : > { %v1998_v32 = vadd.f32 %v2687_v20, %v1989_v29  ;;  %v2001_v26 = vsel %vm831_vm2, %v1999_v30, 0.0  ;;  %2929 = vmatprep.subr.bf16.mxu0 %v3120_v4 }
 0xc9d   : > { %2002 = vadd.xlane.f32.xlu1 %v2001_v26 }
 0xc9e   : > { %v2000_v34 = vadd.f32 %v1998_v32, %v3321_v7 }
 0xc9f   : > { %2930 = vmatpush3.bf16.msra.mxu0 %v3017_v48  ;;  %v2704_v48 = vld [vmem:[%s791_s16] ss:$0 sm:$0xff] }
 0xca0   : > { %v2004_v35 = vsel %vm831_vm2, %v2000_v34, 0.0  ;;  %2931 = vmatprep.subr.bf16.mxu0 %v3120_v4 }
 0xca1   : > { %2005 = vadd.xlane.f32.xlu0 %v2004_v35 }
 0xca3   : > { %2932 = vmatpush3.bf16.msra.mxu0 %v3018_v49 }
 0xca4   : > { %2933 = vmatprep.subr.bf16.mxu0 %v3120_v4 }
 0xca7   : > { %2934 = vmatpush3.bf16.msra.mxu0 %v3019_v50 }
 0xca8   : > { %2935 = vmatprep.subr.bf16.mxu0 %v3120_v4 }
 0xcab   : > { %2936 = vmatpush3.bf16.msra.mxu0 %v3020_v51 }
 0xcac   : > { %2937 = vmatprep.subr.bf16.mxu0 %v3120_v4 }
 0xcaf   : > { %2938 = vmatpush3.bf16.msra.mxu0 %v3021_v63 }
 0xcb0   : > { %2939 = vmatprep.subr.bf16.mxu0 %v3120_v4 }
 0xcb3   : > { %2940 = vmatpush3.bf16.msra.mxu0 %v3022_v0 }
 0xcb4   : > { %2941 = vmatprep.subr.bf16.mxu0 %v3120_v4  ;;  %v2694_v4 = vld [vmem:[%s785_s14] ss:$0 sm:$0xff] }
 0xcb7   : > { %2942 = vmatpush3.bf16.msra.mxu0 %v3023_v1 }
 0xd26   : > { %v2003_v36 = vpop.xlane.xlu1 %2002 }
 0xd27   : > { %v2008_v37 = vmul.f32 0.03125, %v2003_v36 }
 0xd29   : > { %v2010_v38 = vsub.f32 %v1999_v30, %v2008_v37 }
 0xd2a   : > { %v2006_v40 = vpop.xlane.xlu0 %2005 }
 0xd2b   : > { %v2009_v42 = vmul.f32 0.03125, %v2006_v40  ;;  %v2012_v6 = vmul.f32 %v2010_v38, %v2010_v38 }
 0xd2d   : > { %v2011_v43 = vsub.f32 %v2000_v34, %v2009_v42  ;;  %v2014_v44 = vsel %vm831_vm2, %v2012_v6, 0.0 }
 0xd2e   : > { %2015 = vadd.xlane.f32.xlu1 %v2014_v44 }
 0xd2f   : > { %v2013_v25 = vmul.f32 %v2011_v43, %v2011_v43 }
 0xd31   : > { %v2017_v7 = vsel %vm831_vm2, %v2013_v25, 0.0 }
 0xd32   : > { %2018 = vadd.xlane.f32.xlu0 %v2017_v7 }
 0xdb7   : > { %v2016_v52 = vpop.xlane.xlu1 %2015 }
 0xdb8   : > { %v2020_v53 = vmul.f32 0.03125, %v2016_v52 }
 0xdba   : > { %v2022_v19 = vadd.f32 1e-05, %v2020_v53 }
 0xdbb   : > { %v2019_v39 = vpop.xlane.xlu0 %2018 }
 0xdbc   : > { %3056 = vrsqrt.f32 %v2022_v19  ;;  %v2021_v54 = vmul.f32 0.03125, %v2019_v39 }
 0xdbe   : > { %v2023_v23 = vadd.f32 1e-05, %v2021_v54 }
 0xdc0   : > { %3058 = vrsqrt.f32 %v2023_v23 }
 0xdc9   : > { %v3057_v41 = vpop.eup %3056 }
 0xdca   : > { %v2026_v55 = vmul.f32 %v3057_v41, %v2010_v38 }
 0xdcc   : > { %v2035_v33 = vmul.f32 %v2688_v56, %v2026_v55 }
 0xdcd   : > { %v3059_v57 = vpop.eup %3058 }
 0xdce   : > { %v2027_v58 = vmul.f32 %v3059_v57, %v2011_v43  ;;  %v2044_v60 = vadd.f32 %v2689_v59, %v2035_v33 }
 0xdd0   : > { %v2036_v13 = vmul.f32 %v2688_v56, %v2027_v58 }
 0xdd2   : > { %v2045_v61 = vadd.f32 %v2689_v59, %v2036_v13 }
 0xdd4   : > { %v2046_v62 = vpack.c.bf16 %v2045_v61, %v2044_v60 }
 0xdd6   : > { %2924 = vmatmul.mubr.msk.bf16.vlgmr.msra.gmra.mxu1 %vm831_vm2, %v2046_v62 }
 0xe96   : > { %v2107_v2 = vpop.f32.mrf.mxu1 }
 0xe97   : > { %v2108_v5 = vadd.f32 %v2690_v22, %v2107_v2 }
 0xe98   : > { %v2925_v3 = vpop.f32.mrf.mxu1 }
 0xe99   : > { %v2114_v10 = vmax.f32 %v2108_v5, 0.0 }
 0xe9a   : > { %v2110_v17 = vpop.f32.mrf.mxu1 }
 0xe9b   : > { %v2111_v8 = vadd.f32 %v2690_v22, %v2110_v17 }
 0xe9c   : > { %v2926_v9 = vpop.f32.mrf.mxu1 }
 0xe9d   : > { %v2115_v11 = vmax.f32 %v2111_v8, 0.0 }
 0xe9f   : > { %v2116_v12 = vpack.c.bf16 %v2115_v11, %v2114_v10 }
 0xea1   : > { %2944 = vmatmul.mubr.bf16.vlgmr.msra.gmra.mxu0 %v2116_v12 }
 0xf61   : > { %v2222_v14 = vpop.f32.mrf.mxu0 }
 0xf62   : > { %v2223_v15 = vadd.f32 %v2694_v4, %v2222_v14 }
 0xf63   : > { %v2945_v16 = vpop.f32.mrf.mxu0 }
 0xf64   : > { %v2229_v18 = vadd.f32 %v2223_v15, %v2044_v60 }
 0xf65   : > { %v2225_v20 = vpop.f32.mrf.mxu0 }
 0xf66   : > { %v2226_v21 = vadd.f32 %v2694_v4, %v2225_v20  ;;  %v2231_v24 = vsel %vm831_vm2, %v2229_v18, 0.0 }
 0xf67   : > { %2232 = vadd.xlane.f32.xlu1 %v2231_v24  ;;  %v2946_v27 = vpop.f32.mrf.mxu0 }
 0xf68   : > { %v2230_v28 = vadd.f32 %v2226_v21, %v2045_v61 }
 0xf6a   : > { %v2234_v29 = vsel %vm831_vm2, %v2230_v28, 0.0 }
 0xf6b   : > { %2235 = vadd.xlane.f32.xlu0 %v2234_v29 }
 0xff0   : > { %v2233_v30 = vpop.xlane.xlu1 %2232 }
 0xff1   : > { %v2237_v31 = vmul.f32 0.03125, %v2233_v30 }
 0xff3   : > { %v2239_v32 = vsub.f32 %v2229_v18, %v2237_v31 }
 0xff4   : > { %v2236_v26 = vpop.xlane.xlu0 %2235 }
 0xff5   : > { %v2238_v34 = vmul.f32 0.03125, %v2236_v26  ;;  %v2241_v35 = vmul.f32 %v2239_v32, %v2239_v32 }
 0xff7   : > { %v2240_v36 = vsub.f32 %v2230_v28, %v2238_v34  ;;  %v2243_v37 = vsel %vm831_vm2, %v2241_v35, 0.0 }
 0xff8   : > { %2244 = vadd.xlane.f32.xlu1 %v2243_v37 }
 0xff9   : > { %v2242_v38 = vmul.f32 %v2240_v36, %v2240_v36 }
 0xffb   : > { %v2246_v40 = vsel %vm831_vm2, %v2242_v38, 0.0 }
 0xffc   : > { %2247 = vadd.xlane.f32.xlu0 %v2246_v40 }
0x1081   : > { %v2245_v42 = vpop.xlane.xlu1 %2244 }
0x1082   : > { %v2249_v6 = vmul.f32 0.03125, %v2245_v42 }
0x1084   : > { %v2251_v43 = vadd.f32 1e-05, %v2249_v6 }
0x1085   : > { %v2248_v44 = vpop.xlane.xlu0 %2247 }
0x1086   : > { %3060 = vrsqrt.f32 %v2251_v43  ;;  %v2250_v25 = vmul.f32 0.03125, %v2248_v44 }
0x1088   : > { %v2252_v7 = vadd.f32 1e-05, %v2250_v25 }
0x108a   : > { %3062 = vrsqrt.f32 %v2252_v7 }
0x1093   : > { %v3061_v45 = vpop.eup %3060 }
0x1094   : > { %v2255_v47 = vmul.f32 %v3061_v45, %v2239_v32 }
0x1096   : > { %v2264_v49 = vmul.f32 %v2703_v46, %v2255_v47 }
0x1097   : > { %v3063_v50 = vpop.eup %3062 }
0x1098   : > { %v2273_v51 = vadd.f32 %v2704_v48, %v2264_v49  ;;  %v2256_v52 = vmul.f32 %v3063_v50, %v2240_v36 }
0x109a   : > { %2275 = vst.msk [vmem:[#allocation2] sm:$0xff] %vm831_vm2, %v2273_v51  ;;  %v2265_v53 = vmul.f32 %v2703_v46, %v2256_v52  ;;  %2280 = sbr.rel (%p2705_p6) target bundleno = 4663 (0x1237), region = 100 }
0x109c   : > { %v2274_v19 = vadd.f32 %v2704_v48, %v2265_v53 }
0x109e   : > { %2276 = vst.msk [vmem:[#allocation2 + $0x8] sm:$0xff] %vm831_vm2, %v2274_v19 }
0x109f   : > { %v3064_v39 = vld [vmem:[%s3695_s30 + $0x8] sm:$0xff]   ;;  %v3133_v54 = vmov 0.0   ;;  %v3065_v23 = vld [vmem:[%s3695_s30] sm:$0xff]   ;;  %vm3134_vm5 = vmmov 0   ;;  %v3135_v63 = vmov 1966171168   ;;  %v2421_v1 = vlaneseq }
0x10a0   : > { %2947 = vmatprep.subr.bf16.mxu0 %v3133_v54  ;;  %2955 = vmatprep.subr.bf16.mxu1 %v3133_v54  ;;  %v3066_v55 = vld [vmem:[%s3696_s18 + $0x8] sm:$0xff]   ;;  %v3067_v57 = vld [vmem:[%s3696_s18] sm:$0xff]   ;;  %v2419_v0 = vunpack.c.l.s4 %v3135_v63  ;;  %vm2442_vm6 = vcmask 778240  }
0x10a1   : > { %2948 = vmatpush3.bf16.msra.mxu0 %v3064_v39  ;;  %2951 = vmatprep.mubr.msk.bf16.mxu0 %vm3134_vm5, %v3133_v54  ;;  %v2706_v58 = vld [vmem:[%s3697_s28] ss:$0 sm:$0xff]  ;;  %v2422_v2 = vshrl.u32 %v2421_v1, 7 }
0x10a2   : > { %2949 = vmatprep.subr.bf16.mxu0 %v3133_v54  ;;  %2959 = vmatprep.mubr.msk.bf16.mxu1 %vm3134_vm5, %v3133_v54  ;;  %v2420_v22 = vunpack.c.0.s8 %v2419_v0  ;;  %v2710_v3 = vld [vmem:[%s3698_s1] ss:$0 sm:$0xff] }
0x10a3   : > { %2956 = vmatpush3.bf16.msra.mxu1 %v3066_v55 }
0x10a4   : > { %2957 = vmatprep.subr.bf16.mxu1 %v3133_v54  ;;  %v2423_v5 = vsub.s32 %v2420_v22, %v2422_v2 }
0x10a5   : > { %v2282_v41 = vld [vmem:[#allocation2 + $0x7] ss:$8 sm:$0x3]  ;;  %2950 = vmatpush3.bf16.msra.mxu0 %v3065_v23 }
0x10a6   : > { %v2283_v56 = vpack.c.bf16 %v2282_v41, %v2282_v41 }
0x10a7   : > { %2958 = vmatpush3.bf16.msra.mxu1 %v3067_v57 }
0x10a8   : > { %2952 = vmatmul.mubr.msk.bf16.vlgmr.msra.gmra.mxu0 %vm831_vm2, %v2283_v56 }
0x1168   : > { %v2344_v33 = vpop.f32.mrf.mxu0 }
0x1169   : > { %v2345_v59 = vadd.f32 %v2706_v58, %v2344_v33 }
0x116a   : > { %v2953_v13 = vpop.f32.mrf.mxu0 }
0x116b   : > { %v2350_v60 = vpack.c.bf16 %v2345_v59, %v2345_v59 }
0x116c   : > { %v2347_v61 = vpop.f32.mrf.mxu0 }
0x116d   : > { %2960 = vmatmul.mubr.msk.bf16.vlgmr.msra.gmra.mxu1 %vm831_vm2, %v2350_v60 }
0x116e   : > { %v2954_v62 = vpop.f32.mrf.mxu0 }
0x122d   : > { %v2411_v17 = vpop.f32.mrf.mxu1 }
0x122e   : > { %v2412_v8 = vadd.f32 %v2710_v3, %v2411_v17 }
0x122f   : > { %v2961_v9 = vpop.f32.mrf.mxu1 }
0x1230   : > { %v2424_v10 = vrot.slane %v2412_v8, %v2423_v5 }
0x1231   : > { %v2414_v11 = vpop.f32.mrf.mxu1 }
0x1232   : > { %v2425_v12 = vcombine.high %v2424_v10, %v2424_v10  ;;  %v2432_v4 = vrot.slane %v2424_v10, %v2423_v5 }
0x1233   : > { %v2962_v14 = vpop.f32.mrf.mxu1 }
0x1234   : > { %v2439_v15 = vrot.slane %v2425_v12, %v2423_v5  ;;  %2443 = vst.msk [vmem:[#allocation3] sm:$0x1] %vm2442_vm6, %v2432_v4 }
0x1236   : > { %2444 = vst.msk [vmem:[#allocation3 + $0x1] sm:$0x1] %vm2442_vm6, %v2439_v15 }
0x1237 PF: > { %s3699_s29 = sld [smem:[#allocation7_spill]]  ;;  %s3136_s0 = smov [#allocation3]  }
0x1238   : > { %s2454_s22 = sshll.u32 %s3136_s0, 4  ;;  %s2455_s22 = int_to_ptr.vmem [resolvable:$true] %s2454_s22 }
0x1239   : > { %s3068_s2 = scalar_lea.vmem %s2455_s22, 32  ;;  %p3075_p11 = scmp.lt.s32.totalorder %s2455_s22, %s2455_s22 }
0x123a   : > { %p3069_p8 = scmp.ne.s32.totalorder %s2455_s22, %s3068_s2  ;;  %p3076_p12 = scmp.lt.s32.totalorder %s3068_s2, %s3068_s2 }
0x123c   : > { %p3077_p13 = por %p3076_p12, %p3075_p11 }
0x123d   : > { %s3700_s26 = sadd.s32 4294967295, %s3699_s29  }
0x123e   : > { %p3627_p7 = scmp.eq.s32.totalorder %s3700_s26, 1 }
0x1240   : > { %p3070_p9 = pnand %p3069_p8, %p3627_p7 }
0x1242   : > { %p3071_p10 = pneg %p3070_p9 }
0x1244   : > { %p3078_p0 = pnand %p3077_p13, %p3071_p10 }
0x1246   : > { %3081 = shalt.err (!%p3078_p0)
}
0x1247   : > { %s3137_s16 = smov 16   ;;  %s3138_s19 = smov 1  }
0x1248   : > { %s3702_s27 = sld [smem:[#allocation17_spill]] }
0x124e   : > { %2964 = dma.vmem_to_hbm [thread:$0]  (%p3627_p7), %s2455_s22, 32, %s3702_s27, [#allocation4], %s3137_s16, %s3137_s16, %s3138_s19  }
0x124f   : > { %3105 = dma.done.wait (%p3627_p7), [#allocation4], 32  }
0x1250   : > { %3107 = vsyncadd (%p3627_p7), [#allocation4], 4294967264 }
0x1251 PF: > { %s3703_s4 = sld [smem:[#allocation7_spill]] }
0x1252   : > { %s3704_s27 = sld [smem:[#allocation6_spill]] }
0x1253   : > { %s3705_s28 = sld [smem:[#allocation8_spill]] }
0x1257   : > { %s29_s29 = sadd.s32 1, %s3703_s4  }
0x1258   : > { %p26_p1 = scmp.ge.s32.totalorder %s29_s29, 4  }
0x125a   :  { %28 = sbr.rel (!%p26_p1) target bundleno = 12 (0xc), region = 168 }
0x125f   :  { %2470 = vsyncpa [#allocation4], 1 }
0x1260   :  { %2472 = vsyncpa [#allocation4 + $0x1], 1 }

</bundles_post_ra>
